<compile_context>
chip_gen: v5e
topology: v5e:2x2
jax: 0.10.0
libtpu: 0.0.40
codegen_flags: <defaults>
</compile_context>

<pallas_src>
import math

import jax
import jax.numpy as jnp
import numpy as np
from jax.experimental import pallas as pl
from jax.experimental.pallas import tpu as pltpu

# ---------------- model hyper-parameters (small synthetic sizes) ----------------
D_MODEL = 32                        # d_model
N_STATE = 8                         # n_state (SSM state size)
EXPAND = 2
D_INNER = EXPAND * D_MODEL          # 64
D_CONV = 4
DT_RANK = math.ceil(D_MODEL / 16)   # 2
D_FF = 4 * D_MODEL                  # 128
SEQ_LEN = 8
BATCH = 2

LB = BATCH * SEQ_LEN                # 16 rows, batch-major: row r = b*L + t
BN = BATCH * N_STATE                # 16 scan-state rows: row m = b*N + n
LBN = SEQ_LEN * BN                  # 128 expanded rows: row j = t*BN + b*N + n

# ---------------- packed slab layout (one f32 (SLAB_ROWS, 128) input) ------------
SLAB_W = 128
R_WIN = 0        # (32, 128)  [w_in_x | w_in_z]
R_FF1 = 32       # (32, 128)  w_ff1
R_XPROJ = 64     # (64, 18)   [w_dt_in | w_b | w_c]
R_WOUT = 128     # (64, 32)   w_out
R_FF2 = 192      # (128, 32)  w_ff2
R_BFF1 = 320     # (1, 128)   b_ff1
R_BFF2 = 321     # (1, 32)    b_ff2
R_A = 328        # (8, 64)    A = -exp(A_log)
R_WDT = 336      # (2, 64)    dt_proj weight
R_CONVW = 344    # (4, 64)    depthwise conv taps
R_CONVB = 348    # (1, 64)    conv bias
R_BDT = 349      # (1, 64)    dt_proj bias
R_D = 350        # (1, 64)    D (skip) parameter
R_S = 352        # (128, 16)  S one-hot:  j=(t,b,n) -> row r=b*L+t
R_T = 480        # (128, 8)   T one-hot:  j=(t,b,n) -> state n
R_ST = 608       # (16, 128)  S^T
R_TT = 624       # (8, 128)   T^T
R_SHIFT = 632    # (64, 16)   stacked causal shift matrices (per conv tap)
SLAB_ROWS = 696  # multiple of 8


# ---------------- elementwise helpers (VPU / EUP ops) ----------------------------
def _silu(x):
    return x * (1.0 / (1.0 + jnp.exp(-x)))


def _softplus(x):
    # overflow-stable softplus
    return jnp.maximum(x, 0.0) + jnp.log(1.0 + jnp.exp(-jnp.abs(x)))


def _gelu_tanh(x):
    c0 = 0.7978845608028654  # sqrt(2/pi)
    return 0.5 * x * (1.0 + jnp.tanh(c0 * (x + 0.044715 * (x * x * x))))


# ---------------- Pallas kernel ---------------------------------------------------
def mamba_block_kernel(x_ref, p_ref, o_ref, h_ref):
    f32 = jnp.float32
    u = x_ref[...]                                              # (LB, D_MODEL)

    # ---- fused in_proj -> x, z -------------------------------------------------
    w_in = p_ref[R_WIN:R_WIN + D_MODEL, :]                      # (32, 128) [Wx|Wz]
    xz = jnp.dot(u, w_in, preferred_element_type=f32)           # (LB, 128)
    x_in = xz[:, :D_INNER]
    z = xz[:, D_INNER:]

    # ---- causal depthwise conv1d via precomputed shift matrices (idle MXU) ------
    shift_mat = p_ref[R_SHIFT:R_SHIFT + D_CONV * LB, :LB]       # (64, 16)
    x_sh = jnp.dot(shift_mat, x_in, preferred_element_type=f32)  # (64, 64): 4 shifts
    taps = p_ref[R_CONVW:R_CONVW + D_CONV, :D_INNER]            # (4, 64)
    xc = jnp.zeros((LB, D_INNER), f32)
    for k in range(D_CONV):
        xc = xc + taps[k:k + 1, :] * x_sh[k * LB:(k + 1) * LB, :]
    conv_b = p_ref[R_CONVB:R_CONVB + 1, :D_INNER]               # (1, 64)
    xc = _silu(xc + conv_b)                                     # (LB, Din)

    # ---- x_proj -> dt_in | B | C, then dt_proj + softplus -----------------------
    w_xproj = p_ref[R_XPROJ:R_XPROJ + D_INNER, :DT_RANK + 2 * N_STATE]
    dbc = jnp.dot(xc, w_xproj, preferred_element_type=f32)      # (LB, 18)
    dt_in = dbc[:, :DT_RANK]
    Bmat = dbc[:, DT_RANK:DT_RANK + N_STATE]                    # (LB, N)
    Cmat = dbc[:, DT_RANK + N_STATE:]                           # (LB, N)
    w_dt = p_ref[R_WDT:R_WDT + DT_RANK, :D_INNER]               # (2, 64)
    b_dt = p_ref[R_BDT:R_BDT + 1, :D_INNER]                     # (1, 64)
    dt = _softplus(jnp.dot(dt_in, w_dt, preferred_element_type=f32) + b_dt)

    # ---- expand everything to (t, b, n) rows with precomputed one-hot constants --
    s_mat = p_ref[R_S:R_S + LBN, :LB]                           # (LBN, LB)
    t_mat = p_ref[R_T:R_T + LBN, :N_STATE]                      # (LBN, N)
    a_w = p_ref[R_A:R_A + N_STATE, :D_INNER]                    # (N, Din)

    dt_rep = jnp.dot(s_mat, dt, preferred_element_type=f32)           # (LBN, Din)
    dtxc_rep = jnp.dot(s_mat, dt * xc, preferred_element_type=f32)    # (LBN, Din)
    a_rep = jnp.dot(t_mat, a_w, preferred_element_type=f32)           # (LBN, Din)
    dA_all = jnp.exp(dt_rep * a_rep)                                  # (LBN, Din)

    b_exp = jnp.dot(s_mat, Bmat, preferred_element_type=f32)          # (LBN, N)
    b_sel = jnp.sum(b_exp * t_mat, axis=1, keepdims=True)             # (LBN, 1)
    dBu_all = dtxc_rep * b_sel                                        # (LBN, Din)

    # ---- serial scan: only the recurrence stays inside the 8-step loop ----------
    h = jnp.zeros((BN, D_INNER), f32)                                 # rows: b*N + n
    for t in range(SEQ_LEN):
        s = t * BN                                                    # 8-aligned
        h = dA_all[s:s + BN, :] * h + dBu_all[s:s + BN, :]
        h_ref[s:s + BN, :] = h

    # ---- post-loop: one matmul does the C-weighting + per-batch state reduction --
    st_mat = p_ref[R_ST:R_ST + LB, :]                                 # (LB, LBN)
    tt_mat = p_ref[R_TT:R_TT + N_STATE, :]                            # (N, LBN)
    w_y = st_mat * jnp.dot(Cmat, tt_mat, preferred_element_type=f32)  # (LB, LBN)
    y_scan = jnp.dot(w_y, h_ref[...], preferred_element_type=f32)     # (LB, Din)

    # ---- skip term, gate, out_proj, feed-forward ---------------------------------
    d_w = p_ref[R_D:R_D + 1, :D_INNER]                                # (1, 64)
    y = (y_scan + d_w * xc) * _silu(z)                                # (LB, Din)
    w_out = p_ref[R_WOUT:R_WOUT + D_INNER, :D_MODEL]                  # (Din, D)
    mamba_out = jnp.dot(y, w_out, preferred_element_type=f32)         # (LB, D)

    w_ff1 = p_ref[R_FF1:R_FF1 + D_MODEL, :]                           # (D, D_FF)
    b_ff1 = p_ref[R_BFF1:R_BFF1 + 1, :]                               # (1, D_FF)
    h1 = _gelu_tanh(jnp.dot(mamba_out, w_ff1, preferred_element_type=f32) + b_ff1)
    w_ff2 = p_ref[R_FF2:R_FF2 + D_FF, :D_MODEL]                       # (D_FF, D)
    b_ff2 = p_ref[R_BFF2:R_BFF2 + 1, :D_MODEL]                        # (1, D)
    out = jnp.dot(h1, w_ff2, preferred_element_type=f32) + b_ff2
    o_ref[...] = out.astype(o_ref.dtype)


# ---------------- wrapper (no grid, single invocation) -----------------------------
@jax.jit
def vanilla_mamba_block(x, slab):
    B, L, D = x.shape
    assert (B, L, D) == (BATCH, SEQ_LEN, D_MODEL)
    x_flat = x.reshape(B * L, D)                     # batch-major rows: free reshape

    out_flat = pl.pallas_call(
        mamba_block_kernel,
        out_shape=jax.ShapeDtypeStruct((B * L, D), jnp.float32),
        in_specs=[pl.BlockSpec(memory_space=pltpu.MemorySpace.VMEM),
                  pl.BlockSpec(memory_space=pltpu.MemorySpace.VMEM)],
        out_specs=pl.BlockSpec(memory_space=pltpu.MemorySpace.VMEM),
        scratch_shapes=[pltpu.VMEM((LBN, D_INNER), jnp.float32)],   # per-step scan states
    )(x_flat, slab)
    # TODO(synk): on v7x a leading "parallel" grid axis over batch would use the 2nd TC;
    #             at B=2/L=8 the kernel is overhead-bound so it is intentionally single-shot.
    return out_flat.reshape(B, L, D)


# ---------------- host-side constants + one-time parameter packing -----------------
def _build_constants():
    S = np.zeros((LBN, LB), np.float32)
    T = np.zeros((LBN, N_STATE), np.float32)
    for t in range(SEQ_LEN):
        for b in range(BATCH):
            for n in range(N_STATE):
                j = (t * BATCH + b) * N_STATE + n
                S[j, b * SEQ_LEN + t] = 1.0
                T[j, n] = 1.0
    SH = np.zeros((D_CONV * LB, LB), np.float32)
    for k in range(D_CONV):
        lag = D_CONV - 1 - k                       # tap k multiplies x[t - lag]
        for b in range(BATCH):
            for t in range(SEQ_LEN):
                if t >= lag:
                    SH[k * LB + b * SEQ_LEN + t, b * SEQ_LEN + t - lag] = 1.0
    return S, T, np.ascontiguousarray(S.T), np.ascontiguousarray(T.T), SH


def pack_inputs(params):
    """Pack all parameters + one-hot constants into one (SLAB_ROWS, 128) f32 slab.
    Called once; the result is reused for every forward call."""
    pn = {k: np.asarray(v, np.float32) for k, v in params.items()}
    S, T, ST, TT, SH = _build_constants()
    slab = np.zeros((SLAB_ROWS, SLAB_W), np.float32)

    def put(r0, arr):
        slab[r0:r0 + arr.shape[0], :arr.shape[1]] = arr

    put(R_WIN, np.concatenate([pn["w_in_x"], pn["w_in_z"]], axis=1))
    put(R_FF1, pn["w_ff1"])
    put(R_XPROJ, np.concatenate([pn["w_dt_in"], pn["w_b"], pn["w_c"]], axis=1))
    put(R_WOUT, pn["w_out"])
    put(R_FF2, pn["w_ff2"])
    put(R_BFF1, pn["b_ff1"])
    put(R_BFF2, pn["b_ff2"])
    put(R_A, pn["a"])
    put(R_WDT, pn["w_dt"])
    put(R_CONVW, pn["conv_w"])
    put(R_CONVB, pn["conv_b"])
    put(R_BDT, pn["b_dt"])
    put(R_D, pn["d"])
    put(R_S, S)
    put(R_T, T)
    put(R_ST, ST)
    put(R_TT, TT)
    put(R_SHIFT, SH)
    return jnp.asarray(slab)


# ---------------- deterministic parameter init --------------------------------------
def make_params(key):
    ks = jax.random.split(key, 16)

    def init(k, shape, fan_in):
        return (jax.random.normal(k, shape, jnp.float32) / np.sqrt(fan_in)).astype(jnp.float32)

    p = {}
    p["w_in_x"] = init(ks[0], (D_MODEL, D_INNER), D_MODEL)
    p["w_in_z"] = init(ks[1], (D_MODEL, D_INNER), D_MODEL)
    p["conv_w"] = init(ks[2], (D_CONV, D_INNER), D_CONV)
    p["conv_b"] = init(ks[3], (1, D_INNER), 1.0)
    p["w_dt_in"] = init(ks[4], (D_INNER, DT_RANK), D_INNER)
    p["w_b"] = init(ks[5], (D_INNER, N_STATE), D_INNER)
    p["w_c"] = init(ks[6], (D_INNER, N_STATE), D_INNER)
    p["w_dt"] = init(ks[7], (DT_RANK, D_INNER), DT_RANK)
    p["b_dt"] = init(ks[8], (1, D_INNER), 1.0) - 3.0          # small dt after softplus
    # A = -exp(A_log) with A_log[d, n] = log(n+1), stored transposed (N_STATE, D_INNER)
    p["a"] = -jnp.broadcast_to(
        jnp.arange(1, N_STATE + 1, dtype=jnp.float32)[:, None], (N_STATE, D_INNER))
    p["d"] = jnp.ones((1, D_INNER), jnp.float32)
    p["w_out"] = init(ks[9], (D_INNER, D_MODEL), D_INNER)
    p["w_ff1"] = init(ks[10], (D_MODEL, D_FF), D_MODEL)
    p["b_ff1"] = init(ks[11], (1, D_FF), 1.0) * 0.1
    p["w_ff2"] = init(ks[12], (D_FF, D_MODEL), D_FF)
    p["b_ff2"] = init(ks[13], (1, D_MODEL), 1.0) * 0.1
    return p


# ---------------- independent pure-JAX reference (per-batch lax.scan) ----------------
def reference(x, p):
    A = p["a"]                                              # (N, Din)

    def one(u):                                             # u: (L, D_MODEL)
        x_in = u @ p["w_in_x"]
        z = u @ p["w_in_z"]
        xp = jnp.concatenate(
            [jnp.zeros((D_CONV - 1, D_INNER), jnp.float32), x_in], axis=0)
        xc = jnp.zeros_like(x_in)
        for k in range(D_CONV):
            xc = xc + p["conv_w"][k] * xp[k:k + SEQ_LEN]
        xc = _silu(xc + p["conv_b"])
        dt_in = xc @ p["w_dt_in"]
        Bm = xc @ p["w_b"]
        Cm = xc @ p["w_c"]
        dt = _softplus(dt_in @ p["w_dt"] + p["b_dt"])       # (L, Din)

        def step(h, inp):                                   # h: (N, Din)
            dt_t, xc_t, b_t, c_t = inp
            dA = jnp.exp(dt_t[None, :] * A)
            h = dA * h + (dt_t * xc_t)[None, :] * b_t[:, None]
            return h, jnp.sum(c_t[:, None] * h, axis=0)

        h0 = jnp.zeros((N_STATE, D_INNER), jnp.float32)
        _, ys = jax.lax.scan(step, h0, (dt, xc, Bm, Cm))
        y = (ys + p["d"][0] * xc) * _silu(z)
        mo = y @ p["w_out"]
        h1 = _gelu_tanh(mo @ p["w_ff1"] + p["b_ff1"][0])
        return h1 @ p["w_ff2"] + p["b_ff2"][0]

    return jax.vmap(one)(x)


if __name__ == "__main__":
    key = jax.random.PRNGKey(0)
    k_x, k_p = jax.random.split(key)
    x = jax.random.normal(k_x, (BATCH, SEQ_LEN, D_MODEL), jnp.float32)
    params = make_params(k_p)

    slab = pack_inputs(params)        # packed once, cached; not in the per-call path

    out = vanilla_mamba_block(x, slab)
    out = jax.block_until_ready(out)

    ref = jax.block_until_ready(reference(x, params))
    assert out.shape == (BATCH, SEQ_LEN, D_MODEL)
    assert bool(jnp.all(jnp.isfinite(out)))
    np.testing.assert_allclose(np.asarray(out), np.asarray(ref), rtol=1e-2, atol=1e-2)

    print("KERNEL_OK")
</pallas_src>

<mosaic_0001>
module attributes {stable_mosaic.version = 11 : i64} {
  func.func @mamba_block_kernel(%arg0: memref<16x32xf32, #tpu.memory_space<vmem>>, %arg1: memref<696x128xf32, #tpu.memory_space<vmem>>, %arg2: memref<16x32xf32, #tpu.memory_space<vmem>>, %arg3: memref<128x64xf32, #tpu.memory_space<vmem>>) attributes {dimension_semantics = [], scalar_prefetch = 0 : i64, scratch_operands = 1 : i64, tpu.core_type = #tpu.core_type<tc>} {
    %c0 = arith.constant 0 : index
    %c0_0 = arith.constant 0 : index
    %0 = vector.load %arg0[%c0, %c0_0] : memref<16x32xf32, #tpu.memory_space<vmem>>, vector<16x32xf32>
    %c0_1 = arith.constant 0 : index
    %c0_2 = arith.constant 0 : index
    %1 = vector.load %arg1[%c0_1, %c0_2] : memref<696x128xf32, #tpu.memory_space<vmem>>, vector<32x128xf32>
    %cst = arith.constant dense<0.000000e+00> : vector<16x128xf32>
    %2 = tpu.matmul %0, %1, %cst {dimension_numbers = #tpu.dot_dimension_numbers<[1], [0], [0], [1], [0, 0, 1, 1], [], []>} : vector<16x32xf32>, vector<32x128xf32>, vector<16x128xf32> -> vector<16x128xf32>
    %3 = vector.extract_strided_slice %2 {offsets = [0, 0], sizes = [16, 64], strides = [1, 1]} : vector<16x128xf32> to vector<16x64xf32>
    %4 = vector.extract_strided_slice %2 {offsets = [0, 64], sizes = [16, 64], strides = [1, 1]} : vector<16x128xf32> to vector<16x64xf32>
    %c632 = arith.constant 632 : index
    %c0_3 = arith.constant 0 : index
    %5 = vector.load %arg1[%c632, %c0_3] : memref<696x128xf32, #tpu.memory_space<vmem>>, vector<64x16xf32>
    %cst_4 = arith.constant dense<0.000000e+00> : vector<64x64xf32>
    %6 = tpu.matmul %5, %3, %cst_4 {dimension_numbers = #tpu.dot_dimension_numbers<[1], [0], [0], [1], [0, 0, 1, 1], [], []>} : vector<64x16xf32>, vector<16x64xf32>, vector<64x64xf32> -> vector<64x64xf32>
    %c344 = arith.constant 344 : index
    %c0_5 = arith.constant 0 : index
    %7 = vector.load %arg1[%c344, %c0_5] : memref<696x128xf32, #tpu.memory_space<vmem>>, vector<4x64xf32>
    %cst_6 = arith.constant 0.000000e+00 : f32
    %8 = vector.broadcast %cst_6 : f32 to vector<16x64xf32>
    %9 = vector.extract_strided_slice %7 {offsets = [0, 0], sizes = [1, 64], strides = [1, 1]} : vector<4x64xf32> to vector<1x64xf32>
    %10 = vector.extract_strided_slice %6 {offsets = [0, 0], sizes = [16, 64], strides = [1, 1]} : vector<64x64xf32> to vector<16x64xf32>
    %11 = vector.broadcast %9 : vector<1x64xf32> to vector<16x64xf32>
    %12 = arith.mulf %11, %10 : vector<16x64xf32>
    %13 = arith.addf %8, %12 : vector<16x64xf32>
    %14 = vector.extract_strided_slice %7 {offsets = [1, 0], sizes = [1, 64], strides = [1, 1]} : vector<4x64xf32> to vector<1x64xf32>
    %15 = vector.extract_strided_slice %6 {offsets = [16, 0], sizes = [16, 64], strides = [1, 1]} : vector<64x64xf32> to vector<16x64xf32>
    %16 = vector.broadcast %14 : vector<1x64xf32> to vector<16x64xf32>
    %17 = arith.mulf %16, %15 : vector<16x64xf32>
    %18 = arith.addf %13, %17 : vector<16x64xf32>
    %19 = vector.extract_strided_slice %7 {offsets = [2, 0], sizes = [1, 64], strides = [1, 1]} : vector<4x64xf32> to vector<1x64xf32>
    %20 = vector.extract_strided_slice %6 {offsets = [32, 0], sizes = [16, 64], strides = [1, 1]} : vector<64x64xf32> to vector<16x64xf32>
    %21 = vector.broadcast %19 : vector<1x64xf32> to vector<16x64xf32>
    %22 = arith.mulf %21, %20 : vector<16x64xf32>
    %23 = arith.addf %18, %22 : vector<16x64xf32>
    %24 = vector.extract_strided_slice %7 {offsets = [3, 0], sizes = [1, 64], strides = [1, 1]} : vector<4x64xf32> to vector<1x64xf32>
    %25 = vector.extract_strided_slice %6 {offsets = [48, 0], sizes = [16, 64], strides = [1, 1]} : vector<64x64xf32> to vector<16x64xf32>
    %26 = vector.broadcast %24 : vector<1x64xf32> to vector<16x64xf32>
    %27 = arith.mulf %26, %25 : vector<16x64xf32>
    %28 = arith.addf %23, %27 : vector<16x64xf32>
    %c348 = arith.constant 348 : index
    %c0_7 = arith.constant 0 : index
    %29 = vector.load %arg1[%c348, %c0_7] : memref<696x128xf32, #tpu.memory_space<vmem>>, vector<1x64xf32>
    %30 = vector.broadcast %29 : vector<1x64xf32> to vector<16x64xf32>
    %31 = arith.addf %28, %30 : vector<16x64xf32>
    %cst_8 = arith.constant 0.000000e+00 : f32
    %32 = vector.broadcast %cst_8 : f32 to vector<16x64xf32>
    %33 = arith.subf %32, %31 : vector<16x64xf32>
    %34 = math.exp %33 : vector<16x64xf32>
    %cst_9 = arith.constant 1.000000e+00 : f32
    %35 = vector.broadcast %cst_9 : f32 to vector<16x64xf32>
    %36 = arith.addf %35, %34 : vector<16x64xf32>
    %cst_10 = arith.constant 1.000000e+00 : f32
    %37 = vector.broadcast %cst_10 : f32 to vector<16x64xf32>
    %38 = arith.divf %37, %36 : vector<16x64xf32>
    %39 = arith.mulf %31, %38 : vector<16x64xf32>
    %c64 = arith.constant 64 : index
    %c0_11 = arith.constant 0 : index
    %40 = vector.load %arg1[%c64, %c0_11] : memref<696x128xf32, #tpu.memory_space<vmem>>, vector<64x18xf32>
    %cst_12 = arith.constant dense<0.000000e+00> : vector<16x18xf32>
    %41 = tpu.matmul %39, %40, %cst_12 {dimension_numbers = #tpu.dot_dimension_numbers<[1], [0], [0], [1], [0, 0, 1, 1], [], []>} : vector<16x64xf32>, vector<64x18xf32>, vector<16x18xf32> -> vector<16x18xf32>
    %42 = vector.extract_strided_slice %41 {offsets = [0, 0], sizes = [16, 2], strides = [1, 1]} : vector<16x18xf32> to vector<16x2xf32>
    %43 = vector.extract_strided_slice %41 {offsets = [0, 2], sizes = [16, 8], strides = [1, 1]} : vector<16x18xf32> to vector<16x8xf32>
    %44 = vector.extract_strided_slice %41 {offsets = [0, 10], sizes = [16, 8], strides = [1, 1]} : vector<16x18xf32> to vector<16x8xf32>
    %c336 = arith.constant 336 : index
    %c0_13 = arith.constant 0 : index
    %45 = vector.load %arg1[%c336, %c0_13] : memref<696x128xf32, #tpu.memory_space<vmem>>, vector<2x64xf32>
    %c349 = arith.constant 349 : index
    %c0_14 = arith.constant 0 : index
    %46 = vector.load %arg1[%c349, %c0_14] : memref<696x128xf32, #tpu.memory_space<vmem>>, vector<1x64xf32>
    %cst_15 = arith.constant dense<0.000000e+00> : vector<16x64xf32>
    %47 = tpu.matmul %42, %45, %cst_15 {dimension_numbers = #tpu.dot_dimension_numbers<[1], [0], [0], [1], [0, 0, 1, 1], [], []>} : vector<16x2xf32>, vector<2x64xf32>, vector<16x64xf32> -> vector<16x64xf32>
    %48 = vector.broadcast %46 : vector<1x64xf32> to vector<16x64xf32>
    %49 = arith.addf %47, %48 : vector<16x64xf32>
    %cst_16 = arith.constant 0.000000e+00 : f32
    %50 = vector.broadcast %cst_16 : f32 to vector<16x64xf32>
    %51 = arith.maximumf %49, %50 : vector<16x64xf32>
    %52 = math.absf %49 : vector<16x64xf32>
    %cst_17 = arith.constant 0.000000e+00 : f32
    %53 = vector.broadcast %cst_17 : f32 to vector<16x64xf32>
    %54 = arith.subf %53, %52 : vector<16x64xf32>
    %55 = math.exp %54 : vector<16x64xf32>
    %cst_18 = arith.constant 1.000000e+00 : f32
    %56 = vector.broadcast %cst_18 : f32 to vector<16x64xf32>
    %57 = arith.addf %56, %55 : vector<16x64xf32>
    %58 = math.log %57 : vector<16x64xf32>
    %59 = arith.addf %51, %58 : vector<16x64xf32>
    %c352 = arith.constant 352 : index
    %c0_19 = arith.constant 0 : index
    %60 = vector.load %arg1[%c352, %c0_19] : memref<696x128xf32, #tpu.memory_space<vmem>>, vector<128x16xf32>
    %c480 = arith.constant 480 : index
    %c0_20 = arith.constant 0 : index
    %61 = vector.load %arg1[%c480, %c0_20] : memref<696x128xf32, #tpu.memory_space<vmem>>, vector<128x8xf32>
    %c328 = arith.constant 328 : index
    %c0_21 = arith.constant 0 : index
    %62 = vector.load %arg1[%c328, %c0_21] : memref<696x128xf32, #tpu.memory_space<vmem>>, vector<8x64xf32>
    %cst_22 = arith.constant dense<0.000000e+00> : vector<128x64xf32>
    %63 = tpu.matmul %60, %59, %cst_22 {dimension_numbers = #tpu.dot_dimension_numbers<[1], [0], [0], [1], [0, 0, 1, 1], [], []>} : vector<128x16xf32>, vector<16x64xf32>, vector<128x64xf32> -> vector<128x64xf32>
    %64 = arith.mulf %59, %39 : vector<16x64xf32>
    %cst_23 = arith.constant dense<0.000000e+00> : vector<128x64xf32>
    %65 = tpu.matmul %60, %64, %cst_23 {dimension_numbers = #tpu.dot_dimension_numbers<[1], [0], [0], [1], [0, 0, 1, 1], [], []>} : vector<128x16xf32>, vector<16x64xf32>, vector<128x64xf32> -> vector<128x64xf32>
    %cst_24 = arith.constant dense<0.000000e+00> : vector<128x64xf32>
    %66 = tpu.matmul %61, %62, %cst_24 {dimension_numbers = #tpu.dot_dimension_numbers<[1], [0], [0], [1], [0, 0, 1, 1], [], []>} : vector<128x8xf32>, vector<8x64xf32>, vector<128x64xf32> -> vector<128x64xf32>
    %67 = arith.mulf %63, %66 : vector<128x64xf32>
    %68 = math.exp %67 : vector<128x64xf32>
    %cst_25 = arith.constant dense<0.000000e+00> : vector<128x8xf32>
    %69 = tpu.matmul %60, %43, %cst_25 {dimension_numbers = #tpu.dot_dimension_numbers<[1], [0], [0], [1], [0, 0, 1, 1], [], []>} : vector<128x16xf32>, vector<16x8xf32>, vector<128x8xf32> -> vector<128x8xf32>
    %70 = arith.mulf %69, %61 : vector<128x8xf32>
    %cst_26 = arith.constant dense<0.000000e+00> : vector<128xf32>
    %71 = vector.multi_reduction <add>, %70, %cst_26 [1] : vector<128x8xf32> to vector<128xf32>
    %72 = vector.shape_cast %71 : vector<128xf32> to vector<128x1xf32>
    %73 = vector.broadcast %72 : vector<128x1xf32> to vector<128x64xf32>
    %74 = arith.mulf %65, %73 : vector<128x64xf32>
    %cst_27 = arith.constant 0.000000e+00 : f32
    %75 = vector.broadcast %cst_27 : f32 to vector<16x64xf32>
    %76 = vector.extract_strided_slice %68 {offsets = [0, 0], sizes = [16, 64], strides = [1, 1]} : vector<128x64xf32> to vector<16x64xf32>
    %77 = arith.mulf %76, %75 : vector<16x64xf32>
    %78 = vector.extract_strided_slice %74 {offsets = [0, 0], sizes = [16, 64], strides = [1, 1]} : vector<128x64xf32> to vector<16x64xf32>
    %79 = arith.addf %77, %78 : vector<16x64xf32>
    %c0_28 = arith.constant 0 : index
    %c0_29 = arith.constant 0 : index
    %80 = vector.load %arg3[%c0_28, %c0_29] : memref<128x64xf32, #tpu.memory_space<vmem>>, vector<16x64xf32>
    tpu.vector_store %arg3[%c0_28, %c0_29], %79 {strides = array<i32>} : memref<128x64xf32, #tpu.memory_space<vmem>>, vector<16x64xf32>,
    %81 = vector.extract_strided_slice %68 {offsets = [16, 0], sizes = [16, 64], strides = [1, 1]} : vector<128x64xf32> to vector<16x64xf32>
    %82 = arith.mulf %81, %79 : vector<16x64xf32>
    %83 = vector.extract_strided_slice %74 {offsets = [16, 0], sizes = [16, 64], strides = [1, 1]} : vector<128x64xf32> to vector<16x64xf32>
    %84 = arith.addf %82, %83 : vector<16x64xf32>
    %c16 = arith.constant 16 : index
    %c0_30 = arith.constant 0 : index
    %85 = vector.load %arg3[%c16, %c0_30] : memref<128x64xf32, #tpu.memory_space<vmem>>, vector<16x64xf32>
    tpu.vector_store %arg3[%c16, %c0_30], %84 {strides = array<i32>} : memref<128x64xf32, #tpu.memory_space<vmem>>, vector<16x64xf32>,
    %86 = vector.extract_strided_slice %68 {offsets = [32, 0], sizes = [16, 64], strides = [1, 1]} : vector<128x64xf32> to vector<16x64xf32>
    %87 = arith.mulf %86, %84 : vector<16x64xf32>
    %88 = vector.extract_strided_slice %74 {offsets = [32, 0], sizes = [16, 64], strides = [1, 1]} : vector<128x64xf32> to vector<16x64xf32>
    %89 = arith.addf %87, %88 : vector<16x64xf32>
    %c32 = arith.constant 32 : index
    %c0_31 = arith.constant 0 : index
    %90 = vector.load %arg3[%c32, %c0_31] : memref<128x64xf32, #tpu.memory_space<vmem>>, vector<16x64xf32>
    tpu.vector_store %arg3[%c32, %c0_31], %89 {strides = array<i32>} : memref<128x64xf32, #tpu.memory_space<vmem>>, vector<16x64xf32>,
    %91 = vector.extract_strided_slice %68 {offsets = [48, 0], sizes = [16, 64], strides = [1, 1]} : vector<128x64xf32> to vector<16x64xf32>
    %92 = arith.mulf %91, %89 : vector<16x64xf32>
    %93 = vector.extract_strided_slice %74 {offsets = [48, 0], sizes = [16, 64], strides = [1, 1]} : vector<128x64xf32> to vector<16x64xf32>
    %94 = arith.addf %92, %93 : vector<16x64xf32>
    %c48 = arith.constant 48 : index
    %c0_32 = arith.constant 0 : index
    %95 = vector.load %arg3[%c48, %c0_32] : memref<128x64xf32, #tpu.memory_space<vmem>>, vector<16x64xf32>
    tpu.vector_store %arg3[%c48, %c0_32], %94 {strides = array<i32>} : memref<128x64xf32, #tpu.memory_space<vmem>>, vector<16x64xf32>,
    %96 = vector.extract_strided_slice %68 {offsets = [64, 0], sizes = [16, 64], strides = [1, 1]} : vector<128x64xf32> to vector<16x64xf32>
    %97 = arith.mulf %96, %94 : vector<16x64xf32>
    %98 = vector.extract_strided_slice %74 {offsets = [64, 0], sizes = [16, 64], strides = [1, 1]} : vector<128x64xf32> to vector<16x64xf32>
    %99 = arith.addf %97, %98 : vector<16x64xf32>
    %c64_33 = arith.constant 64 : index
    %c0_34 = arith.constant 0 : index
    %100 = vector.load %arg3[%c64_33, %c0_34] : memref<128x64xf32, #tpu.memory_space<vmem>>, vector<16x64xf32>
    tpu.vector_store %arg3[%c64_33, %c0_34], %99 {strides = array<i32>} : memref<128x64xf32, #tpu.memory_space<vmem>>, vector<16x64xf32>,
    %101 = vector.extract_strided_slice %68 {offsets = [80, 0], sizes = [16, 64], strides = [1, 1]} : vector<128x64xf32> to vector<16x64xf32>
    %102 = arith.mulf %101, %99 : vector<16x64xf32>
    %103 = vector.extract_strided_slice %74 {offsets = [80, 0], sizes = [16, 64], strides = [1, 1]} : vector<128x64xf32> to vector<16x64xf32>
    %104 = arith.addf %102, %103 : vector<16x64xf32>
    %c80 = arith.constant 80 : index
    %c0_35 = arith.constant 0 : index
    %105 = vector.load %arg3[%c80, %c0_35] : memref<128x64xf32, #tpu.memory_space<vmem>>, vector<16x64xf32>
    tpu.vector_store %arg3[%c80, %c0_35], %104 {strides = array<i32>} : memref<128x64xf32, #tpu.memory_space<vmem>>, vector<16x64xf32>,
    %106 = vector.extract_strided_slice %68 {offsets = [96, 0], sizes = [16, 64], strides = [1, 1]} : vector<128x64xf32> to vector<16x64xf32>
    %107 = arith.mulf %106, %104 : vector<16x64xf32>
    %108 = vector.extract_strided_slice %74 {offsets = [96, 0], sizes = [16, 64], strides = [1, 1]} : vector<128x64xf32> to vector<16x64xf32>
    %109 = arith.addf %107, %108 : vector<16x64xf32>
    %c96 = arith.constant 96 : index
    %c0_36 = arith.constant 0 : index
    %110 = vector.load %arg3[%c96, %c0_36] : memref<128x64xf32, #tpu.memory_space<vmem>>, vector<16x64xf32>
    tpu.vector_store %arg3[%c96, %c0_36], %109 {strides = array<i32>} : memref<128x64xf32, #tpu.memory_space<vmem>>, vector<16x64xf32>,
    %111 = vector.extract_strided_slice %68 {offsets = [112, 0], sizes = [16, 64], strides = [1, 1]} : vector<128x64xf32> to vector<16x64xf32>
    %112 = arith.mulf %111, %109 : vector<16x64xf32>
    %113 = vector.extract_strided_slice %74 {offsets = [112, 0], sizes = [16, 64], strides = [1, 1]} : vector<128x64xf32> to vector<16x64xf32>
    %114 = arith.addf %112, %113 : vector<16x64xf32>
    %c112 = arith.constant 112 : index
    %c0_37 = arith.constant 0 : index
    %115 = vector.load %arg3[%c112, %c0_37] : memref<128x64xf32, #tpu.memory_space<vmem>>, vector<16x64xf32>
    tpu.vector_store %arg3[%c112, %c0_37], %114 {strides = array<i32>} : memref<128x64xf32, #tpu.memory_space<vmem>>, vector<16x64xf32>,
    %c608 = arith.constant 608 : index
    %c0_38 = arith.constant 0 : index
    %116 = vector.load %arg1[%c608, %c0_38] : memref<696x128xf32, #tpu.memory_space<vmem>>, vector<16x128xf32>
    %c624 = arith.constant 624 : index
    %c0_39 = arith.constant 0 : index
    %117 = vector.load %arg1[%c624, %c0_39] : memref<696x128xf32, #tpu.memory_space<vmem>>, vector<8x128xf32>
    %cst_40 = arith.constant dense<0.000000e+00> : vector<16x128xf32>
    %118 = tpu.matmul %44, %117, %cst_40 {dimension_numbers = #tpu.dot_dimension_numbers<[1], [0], [0], [1], [0, 0, 1, 1], [], []>} : vector<16x8xf32>, vector<8x128xf32>, vector<16x128xf32> -> vector<16x128xf32>
    %119 = arith.mulf %116, %118 : vector<16x128xf32>
    %c0_41 = arith.constant 0 : index
    %c0_42 = arith.constant 0 : index
    %120 = vector.load %arg3[%c0_41, %c0_42] : memref<128x64xf32, #tpu.memory_space<vmem>>, vector<128x64xf32>
    %cst_43 = arith.constant dense<0.000000e+00> : vector<16x64xf32>
    %121 = tpu.matmul %119, %120, %cst_43 {dimension_numbers = #tpu.dot_dimension_numbers<[1], [0], [0], [1], [0, 0, 1, 1], [], []>} : vector<16x128xf32>, vector<128x64xf32>, vector<16x64xf32> -> vector<16x64xf32>
    %c350 = arith.constant 350 : index
    %c0_44 = arith.constant 0 : index
    %122 = vector.load %arg1[%c350, %c0_44] : memref<696x128xf32, #tpu.memory_space<vmem>>, vector<1x64xf32>
    %123 = vector.broadcast %122 : vector<1x64xf32> to vector<16x64xf32>
    %124 = arith.mulf %123, %39 : vector<16x64xf32>
    %125 = arith.addf %121, %124 : vector<16x64xf32>
    %cst_45 = arith.constant 0.000000e+00 : f32
    %126 = vector.broadcast %cst_45 : f32 to vector<16x64xf32>
    %127 = arith.subf %126, %4 : vector<16x64xf32>
    %128 = math.exp %127 : vector<16x64xf32>
    %cst_46 = arith.constant 1.000000e+00 : f32
    %129 = vector.broadcast %cst_46 : f32 to vector<16x64xf32>
    %130 = arith.addf %129, %128 : vector<16x64xf32>
    %cst_47 = arith.constant 1.000000e+00 : f32
    %131 = vector.broadcast %cst_47 : f32 to vector<16x64xf32>
    %132 = arith.divf %131, %130 : vector<16x64xf32>
    %133 = arith.mulf %4, %132 : vector<16x64xf32>
    %134 = arith.mulf %125, %133 : vector<16x64xf32>
    %c128 = arith.constant 128 : index
    %c0_48 = arith.constant 0 : index
    %135 = vector.load %arg1[%c128, %c0_48] : memref<696x128xf32, #tpu.memory_space<vmem>>, vector<64x32xf32>
    %cst_49 = arith.constant dense<0.000000e+00> : vector<16x32xf32>
    %136 = tpu.matmul %134, %135, %cst_49 {dimension_numbers = #tpu.dot_dimension_numbers<[1], [0], [0], [1], [0, 0, 1, 1], [], []>} : vector<16x64xf32>, vector<64x32xf32>, vector<16x32xf32> -> vector<16x32xf32>
    %c32_50 = arith.constant 32 : index
    %c0_51 = arith.constant 0 : index
    %137 = vector.load %arg1[%c32_50, %c0_51] : memref<696x128xf32, #tpu.memory_space<vmem>>, vector<32x128xf32>
    %c320 = arith.constant 320 : index
    %c0_52 = arith.constant 0 : index
    %138 = vector.load %arg1[%c320, %c0_52] : memref<696x128xf32, #tpu.memory_space<vmem>>, vector<1x128xf32>
    %cst_53 = arith.constant dense<0.000000e+00> : vector<16x128xf32>
    %139 = tpu.matmul %136, %137, %cst_53 {dimension_numbers = #tpu.dot_dimension_numbers<[1], [0], [0], [1], [0, 0, 1, 1], [], []>} : vector<16x32xf32>, vector<32x128xf32>, vector<16x128xf32> -> vector<16x128xf32>
    %140 = vector.broadcast %138 : vector<1x128xf32> to vector<16x128xf32>
    %141 = arith.addf %139, %140 : vector<16x128xf32>
    %cst_54 = arith.constant 5.000000e-01 : f32
    %142 = vector.broadcast %cst_54 : f32 to vector<16x128xf32>
    %143 = arith.mulf %142, %141 : vector<16x128xf32>
    %144 = arith.mulf %141, %141 : vector<16x128xf32>
    %145 = arith.mulf %144, %141 : vector<16x128xf32>
    %cst_55 = arith.constant 4.471500e-02 : f32
    %146 = vector.broadcast %cst_55 : f32 to vector<16x128xf32>
    %147 = arith.mulf %146, %145 : vector<16x128xf32>
    %148 = arith.addf %141, %147 : vector<16x128xf32>
    %cst_56 = arith.constant 0.797884583 : f32
    %149 = vector.broadcast %cst_56 : f32 to vector<16x128xf32>
    %150 = arith.mulf %149, %148 : vector<16x128xf32>
    %151 = math.tanh %150 : vector<16x128xf32>
    %cst_57 = arith.constant 1.000000e+00 : f32
    %152 = vector.broadcast %cst_57 : f32 to vector<16x128xf32>
    %153 = arith.addf %152, %151 : vector<16x128xf32>
    %154 = arith.mulf %143, %153 : vector<16x128xf32>
    %c192 = arith.constant 192 : index
    %c0_58 = arith.constant 0 : index
    %155 = vector.load %arg1[%c192, %c0_58] : memref<696x128xf32, #tpu.memory_space<vmem>>, vector<128x32xf32>
    %c321 = arith.constant 321 : index
    %c0_59 = arith.constant 0 : index
    %156 = vector.load %arg1[%c321, %c0_59] : memref<696x128xf32, #tpu.memory_space<vmem>>, vector<1x32xf32>
    %cst_60 = arith.constant dense<0.000000e+00> : vector<16x32xf32>
    %157 = tpu.matmul %154, %155, %cst_60 {dimension_numbers = #tpu.dot_dimension_numbers<[1], [0], [0], [1], [0, 0, 1, 1], [], []>} : vector<16x128xf32>, vector<128x32xf32>, vector<16x32xf32> -> vector<16x32xf32>
    %158 = vector.broadcast %156 : vector<1x32xf32> to vector<16x32xf32>
    %159 = arith.addf %157, %158 : vector<16x32xf32>
    %c0_61 = arith.constant 0 : index
    %c0_62 = arith.constant 0 : index
    %160 = vector.load %arg2[%c0_61, %c0_62] : memref<16x32xf32, #tpu.memory_space<vmem>>, vector<16x32xf32>
    tpu.vector_store %arg2[%c0_61, %c0_62], %159 {strides = array<i32>} : memref<16x32xf32, #tpu.memory_space<vmem>>, vector<16x32xf32>,
    return
  }
}

</mosaic_0001>

<bundles_post_ra>
// kernel: vanilla_mamba_block.1
= control target key start
LH: loop header
LB: loop body
LE: loop exit
PB: predicated region body
PF: predicated region fallthrough
CT: control target
= control target key end

     0   :  { %7 = vsyncpa [#allocation4], 0  ;;  %s1641_s0 = inlined_call_operand.hbm [shape: f32[16,32], index: 0, kind: input, shape index: {}]   ;;  %s1642_s1 = inlined_call_operand.hbm [shape: f32[696,128], index: 1, kind: input, shape index: {}]   ;;  %s1643_s2 = inlined_call_operand.hbm [shape: f32[16,32], index: 2, kind: output, shape index: {}]  }
   0x1   :  { %8 = vsyncpa [#allocation7], 0 }
   0x2   :  { %9 = vsyncpa [#allocation5], 0  ;;  %s14_s11 = sshll.u32 %s1641_s0, 4  ;;  %s1411_s12 = smov [#allocation3]   ;;  %s15_s11 = int_to_ptr.hbm [resolvable:$true] %s14_s11 }
   0x3   :  { %s16_s13 = sshll.u32 %s1411_s12, 4  ;;  %s27_s16 = sshll.u32 %s1642_s1, 4  ;;  %s17_s13 = int_to_ptr.vmem [resolvable:$true] %s16_s13  ;;  %s28_s16 = int_to_ptr.hbm [resolvable:$true] %s27_s16 }
   0x4   :  { %s1412_s17 = smov 128   ;;  %s1413_s18 = smov 8  }
   0x5   :  { %22 = dma.hbm_to_vmem [thread:$0]  %s15_s11, 256, %s17_s13, [#allocation4], %s1412_s17, %s1412_s17, %s1413_s18  }
   0x6   :  { %s1414_s19 = smov [#allocation6]  }
   0x7   :  { %s29_s20 = sshll.u32 %s1414_s19, 4  ;;  %s30_s20 = int_to_ptr.vmem [resolvable:$true] %s29_s20 }
   0x8   :  { %35 = dma.hbm_to_vmem [thread:$0]  %s28_s16, 11136, %s30_s20, [#allocation7], %s1412_s17, %s1412_s17, %s1413_s18  }
   0x9   :  { %1405 = dma.done.wait [#allocation4], 256  }
   0xa   :  { %1406 = vsyncadd [#allocation4], 4294967040 }
   0xb   :  { %1407 = dma.done.wait [#allocation7], 11136  }
   0xc   :  { %1408 = vsyncadd [#allocation7], 4294956160  ;;  %v49_v0 = vld [vmem:[#allocation6 + $0x18] sm:$0xff]  ;;  %v48_v1 = vld [vmem:[#allocation6 + $0x10] sm:$0xff]  ;;  %vm50_vm0 = vcmask 261120   ;;  %vm88_vm1 = vcmask 130048  }
   0xd   :  { %69 = vmatpush.msra.mxu2 %v49_v0  ;;  %v47_v2 = vld [vmem:[#allocation6 + $0x8] sm:$0xff]  ;;  %v46_v3 = vld [vmem:[#allocation6] sm:$0xff]  ;;  %v44_v4 = vld [vmem:[#allocation3] sm:$0xff]  ;;  %vm227_vm7 = vcmask 523264   ;;  %vm267_vm11 = vcmask 1041408   ;;  %vm260_vm12 = vcmask 15360  }
   0xe   :  { %v45_v5 = vld [vmem:[#allocation3 + $0x8] sm:$0xff]  ;;  %v87_v9 = vld [vmem:[#allocation6 + $0x2b0] sm:$0xff]  ;;  %v81_v10 = vld [vmem:[#allocation6 + $0x280] sm:$0xff]  ;;  %s1415_s0 = smov 118   ;;  %s1416_s1 = smov 126   ;;  %vm525_vm13 = vcmask 64512  }
   0xf   :  { %70 = vmatpush.msra.mxu2 %v48_v1  ;;  %v80_v8 = vld [vmem:[#allocation6 + $0x278] sm:$0xff]  ;;  %v82_v11 = vld [vmem:[#allocation6 + $0x288] sm:$0xff]  ;;  %v83_v12 = vld [vmem:[#allocation6 + $0x290] sm:$0xff]  ;;  %s1417_s21 = smov 64   ;;  %s1418_s22 = smov [#allocation8]  }
  0x10   :  { %v84_v13 = vld [vmem:[#allocation6 + $0x298] sm:$0xff]  ;;  %v85_v14 = vld [vmem:[#allocation6 + $0x2a0] sm:$0xff]  ;;  %v86_v15 = vld [vmem:[#allocation6 + $0x2a8] sm:$0xff]  ;;  %s1152_s23 = sshll.u32 %s1418_s22, 4  ;;  %s1154_s26 = sshll.u32 %s1643_s2, 4  ;;  %s1153_s23 = int_to_ptr.vmem [resolvable:$true] %s1152_s23  ;;  %s1155_s26 = int_to_ptr.hbm [resolvable:$true] %s1154_s26 }
  0x11   :  { %71 = vmatpush.msra.mxu2 %v47_v2  ;;  %v154_v21 = vld [vmem:[#allocation6 + $0x158] sm:$0xf]  ;;  %v225_v34 = vld [vmem:[#allocation6 + $0x70] sm:$0xff]  ;;  %v1268_v37 = vld [vmem:[#allocation6 + $0x15c] ss:$0 sm:$0xff] }
  0x12   :  { %v160_v22 = vperm.slane %v154_v21, 1  ;;  %v155_v23 = vperm.slane %v154_v21, 0  ;;  %v170_v25 = vperm.slane %v154_v21, 3  ;;  %v165_v28 = vperm.slane %v154_v21, 2  ;;  %v226_v29 = vld [vmem:[#allocation6 + $0x78] sm:$0xff]  ;;  %v224_v38 = vld [vmem:[#allocation6 + $0x68] sm:$0xff] }
  0x13   :  { %72 = vmatpush.msra.mxu2 %v46_v3  ;;  %v223_v42 = vld [vmem:[#allocation6 + $0x60] sm:$0xff]  ;;  %v222_v45 = vld [vmem:[#allocation6 + $0x58] sm:$0xff]  ;;  %v221_v50 = vld [vmem:[#allocation6 + $0x50] sm:$0xff] }
  0x14   :  { %1168 = vmatmul.msk.f32.vlgmr.msra.gmra.mxu2 %vm50_vm0, %v44_v4  ;;  %v220_v53 = vld [vmem:[#allocation6 + $0x48] sm:$0xff]  ;;  %v219_v55 = vld [vmem:[#allocation6 + $0x40] sm:$0xff] }
  0x15   :  { %242 = vmatpush.msrb.mxu2 %v226_v29  ;;  %v312_v29 = vld [vmem:[#allocation6 + $0x160] sm:$0xff] }
  0x17   :  { %243 = vmatpush.msrb.mxu2 %v225_v34  ;;  %v313_v34 = vld [vmem:[#allocation6 + $0x168] sm:$0xff] }
  0x19   :  { %244 = vmatpush.msrb.mxu2 %v224_v38 }
  0x1b   :  { %245 = vmatpush.msrb.mxu2 %v223_v42 }
  0x1c   :  { %1169 = vmatmul.msk.f32.gmra.mxu2 %vm50_vm0, %v45_v5 }
  0x1d   :  { %246 = vmatpush.msrb.mxu2 %v222_v45  ;;  %v315_v45 = vld [vmem:[#allocation6 + $0x178] sm:$0xff] }
  0x1f   :  { %247 = vmatpush.msrb.mxu2 %v221_v50 }
  0x21   :  { %248 = vmatpush.msrb.mxu2 %v220_v53 }
  0x23   :  { %249 = vmatpush.msrb.mxu2 %v219_v55 }
  0x97   :  { %v1448_v6 = vpop.f32.mrf.mxu2 }
  0x9f   :  { %v1450_v7 = vpop.f32.mrf.mxu2 }
  0xa0   :  { %127 = vmatpush.msra.mxu1 %v1450_v7  ;;  %1253 = vmatpush.msra.mxu3 %v1450_v7 }
  0xa2   :  { %128 = vmatpush.msra.mxu1 %v1448_v6  ;;  %1254 = vmatpush.msra.mxu3 %v1448_v6 }
  0xa3   :  { %1170 = vmatmul.msk.f32.vlgmr.msra.gmra.mxu1 %vm88_vm1, %v80_v8  ;;  %1177 = vmatmul.msk.f32.vlgmr.msra.gmra.mxu3 %vm88_vm1, %v87_v9 }
  0xab   :  { %1171 = vmatmul.msk.f32.gmra.mxu1 %vm88_vm1, %v81_v10 }
  0xb3   :  { %1172 = vmatmul.msk.f32.gmra.mxu1 %vm88_vm1, %v82_v11 }
  0xbb   :  { %1173 = vmatmul.msk.f32.gmra.mxu1 %vm88_vm1, %v83_v12 }
  0xc3   :  { %1174 = vmatmul.msk.f32.gmra.mxu1 %vm88_vm1, %v84_v13 }
  0xcb   :  { %1175 = vmatmul.msk.f32.gmra.mxu1 %vm88_vm1, %v85_v14 }
  0xd3   :  { %1176 = vmatmul.msk.f32.gmra.mxu1 %vm88_vm1, %v86_v15 }
 0x120   :  { %v130_v16 = vpop.f32.mrf.mxu1 }
 0x121   :  { %v156_v39 = vmul.f32 %v155_v23, %v130_v16 }
 0x126   :  { %v151_v26 = vpop.f32.mrf.mxu3 }
 0x127   :  { %v172_v33 = vmul.f32 %v170_v25, %v151_v26 }
 0x128   :  { %v133_v17 = vpop.f32.mrf.mxu1 }
 0x129   :  { %v157_v27 = vmul.f32 %v155_v23, %v133_v17 }
 0x130   :  { %v136_v18 = vpop.f32.mrf.mxu1 }
 0x131   :  { %v161_v35 = vmul.f32 %v160_v22, %v136_v18 }
 0x133   :  { %v163_v43 = vadd.f32 %v161_v35, %v156_v39 }
 0x138   :  { %v139_v19 = vpop.f32.mrf.mxu1 }
 0x139   :  { %v162_v24 = vmul.f32 %v160_v22, %v139_v19  ;;  %v257_v22 = vld [vmem:[#allocation6 + $0x150] sm:$0x3] }
 0x13a   :  { %1180 = vmatpush.msk.msrb.mxu3 %vm267_vm11, %v257_v22 }
 0x13b   :  { %v164_v31 = vadd.f32 %v162_v24, %v157_v27 }
 0x140   :  { %v142_v20 = vpop.f32.mrf.mxu1 }
 0x141   :  { %v166_v40 = vmul.f32 %v165_v28, %v142_v20 }
 0x143   :  { %v168_v47 = vadd.f32 %v166_v40, %v163_v43  ;;  %v314_v40 = vld [vmem:[#allocation6 + $0x170] sm:$0xff] }
 0x148   :  { %v145_v30 = vpop.f32.mrf.mxu1 }
 0x149   :  { %v167_v32 = vmul.f32 %v165_v28, %v145_v30  ;;  %v1269_v30 = vld [vmem:[#allocation6 + $0x15d] ss:$0 sm:$0xff] }
 0x14b   :  { %v169_v36 = vadd.f32 %v167_v32, %v164_v31 }
 0x14d   :  { %v174_v41 = vadd.f32 %v172_v33, %v169_v36 }
 0x14f   :  { %v178_v44 = vadd.f32 %v1268_v37, %v174_v41 }
 0x150   :  { %v148_v46 = vpop.f32.mrf.mxu1 }
 0x151   :  { %v180_v48 = vsub.f32 0.0, %v178_v44  ;;  %v171_v49 = vmul.f32 %v170_v25, %v148_v46 }
 0x153   :  { %v183_v51 = vmul.f32 1.442695, %v180_v48  ;;  %v173_v52 = vadd.f32 %v171_v49, %v168_v47  ;;  %v316_v49 = vld [vmem:[#allocation6 + $0x180] sm:$0xff] }
 0x155   :  { %1273 = vpow2.f32 %v183_v51  ;;  %v177_v54 = vadd.f32 %v1268_v37, %v173_v52 }
 0x157   :  { %v179_v56 = vsub.f32 0.0, %v177_v54 }
 0x159   :  { %v181_v57 = vmul.f32 1.442695, %v179_v56 }
 0x15b   :  { %v1274_v58 = vpop.eup %1273  ;;  %1275 = vpow2.f32 %v181_v57 }
 0x15c   :  { %v186_v59 = vadd.f32 1.0, %v1274_v58  ;;  %v317_v58 = vld [vmem:[#allocation6 + $0x188] sm:$0xff] }
 0x15e   :  { %1277 = vrcp.f32 %v186_v59  ;;  %v213_v15 = vand.u32 2147483648, %v186_v59  ;;  %vm207_vm8 = vweird.f32 %v186_v59  ;;  %v211_v17 = vand.u32 2147483647, %v186_v59 }
 0x160   :  { %v214_v19 = vor.u32 1.1754944e-38, %v213_v15  ;;  %vm212_vm10 = vcmp.eq.f32.partialorder %v211_v17, 8.507059e+37  ;;  %v1521_v15 = vld [vmem:[#allocation6 + $0x218] sm:$0xff] }
 0x161   :  { %v1276_v60 = vpop.eup %1275  ;;  %v327_v17 = vld [vmem:[#allocation6 + $0x1d8] sm:$0xff] }
 0x162   :  { %v185_v61 = vadd.f32 1.0, %v1276_v60  ;;  %v318_v60 = vld [vmem:[#allocation6 + $0x190] sm:$0xff] }
 0x164   :  { %v1278_v62 = vpop.eup %1277  ;;  %1279 = vrcp.f32 %v185_v61  ;;  %v198_v4 = vand.u32 2147483648, %v185_v61  ;;  %v196_v8 = vand.u32 2147483647, %v185_v61  ;;  %vm192_vm3 = vweird.f32 %v185_v61 }
 0x165   :  { %v203_v63 = vmul.f32 %v1278_v62, %v186_v59  ;;  %vm208_vm6 = vweird.f32 %v1278_v62 }
 0x166   :  { %v199_v11 = vor.u32 1.1754944e-38, %v198_v4  ;;  %vm197_vm5 = vcmp.eq.f32.partialorder %v196_v8, 8.507059e+37  ;;  %vm209_vm9 = vmor %vm207_vm8, %vm208_vm6  ;;  %v322_v4 = vld [vmem:[#allocation6 + $0x1b0] sm:$0xff]  ;;  %v323_v8 = vld [vmem:[#allocation6 + $0x1b8] sm:$0xff] }
 0x167   :  { %v204_v2 = vsub.f32 1.0, %v203_v63  ;;  %v328_v63 = vld [vmem:[#allocation6 + $0x1e0] sm:$0xff] }
 0x169   :  { %v205_v9 = vmul.f32 %v1278_v62, %v204_v2  ;;  %v321_v2 = vld [vmem:[#allocation6 + $0x1a8] sm:$0xff] }
 0x16a   :  { %v1280_v0 = vpop.eup %1279 }
 0x16b   :  { %v188_v1 = vmul.f32 %v1280_v0, %v185_v61  ;;  %vm193_vm2 = vweird.f32 %v1280_v0  ;;  %v206_v13 = vadd.f32 %v1278_v62, %v205_v9  ;;  %v319_v61 = vld [vmem:[#allocation6 + $0x198] sm:$0xff]  ;;  %v332_v9 = vld [vmem:[#allocation6 + $0x200] sm:$0xff] }
 0x16c   :  { %vm194_vm4 = vmor %vm192_vm3, %vm193_vm2 }
 0x16d   :  { %v189_v3 = vsub.f32 1.0, %v188_v1  ;;  %v210_v18 = vsel %vm209_vm9, %v1278_v62, %v206_v13  ;;  %v344_v62 = vld [vmem:[#allocation6 + $0x148] sm:$0xff]  ;;  %v1514_v13 = vld [vmem:[#allocation6 + $0x210] sm:$0xff] }
 0x16e   :  { %v215_v20 = vsel %vm212_vm10, %v214_v19, %v210_v18  ;;  %589 = vmatpush.msra.mxu2 %v344_v62  ;;  %v329_v1 = vld [vmem:[#allocation6 + $0x1e8] sm:$0xff]  ;;  %v1528_v18 = vld [vmem:[#allocation6 + $0x220] sm:$0xff] }
 0x16f   :  { %v190_v5 = vmul.f32 %v1280_v0, %v189_v3  ;;  %v1468_v21 = vmul.f32 %v215_v20, %v178_v44  ;;  %v330_v3 = vld [vmem:[#allocation6 + $0x1f0] sm:$0xff] }
 0x171   :  { %v191_v10 = vadd.f32 %v1280_v0, %v190_v5  ;;  %v331_v5 = vld [vmem:[#allocation6 + $0x1f8] sm:$0xff] }
 0x173   :  { %v195_v12 = vsel %vm194_vm4, %v1280_v0, %v191_v10  ;;  %v320_v0 = vld [vmem:[#allocation6 + $0x1a0] sm:$0xff] }
 0x174   :  { %v200_v14 = vsel %vm197_vm5, %v199_v11, %v195_v12  ;;  %v324_v10 = vld [vmem:[#allocation6 + $0x1c0] sm:$0xff]  ;;  %v1507_v11 = vld [vmem:[#allocation6 + $0x208] sm:$0xff] }
 0x175   :  { %v1464_v16 = vmul.f32 %v200_v14, %v177_v54  ;;  %v325_v12 = vld [vmem:[#allocation6 + $0x1c8] sm:$0xff]  ;;  %v326_v14 = vld [vmem:[#allocation6 + $0x1d0] sm:$0xff] }
 0x177   :  { %1178 = vmatmul.msk.f32.vlgmr.msrb.gmra.mxu2 %vm227_vm7, %v1464_v16 }
 0x17f   :  { %1179 = vmatmul.msk.f32.gmra.mxu2 %vm227_vm7, %v1468_v21 }
 0x187   :  { %1215 = vmatmul.msk.f32.vlgmr.msra.gmra.mxu2 %vm525_vm13, %v328_v63 }
 0x18f   :  { %1216 = vmatmul.msk.f32.gmra.mxu2 %vm525_vm13, %v329_v1 }
 0x197   :  { %1217 = vmatmul.msk.f32.gmra.mxu2 %vm525_vm13, %v330_v3 }
 0x19f   :  { %1218 = vmatmul.msk.f32.gmra.mxu2 %vm525_vm13, %v331_v5 }
 0x1a7   :  { %1219 = vmatmul.msk.f32.gmra.mxu2 %vm525_vm13, %v332_v9 }
 0x1af   :  { %1220 = vmatmul.msk.f32.gmra.mxu2 %vm525_vm13, %v1507_v11 }
 0x1b7   :  { %1221 = vmatmul.msk.f32.gmra.mxu2 %vm525_vm13, %v1514_v13 }
 0x1bf   :  { %1222 = vmatmul.msk.f32.gmra.mxu2 %vm525_vm13, %v1521_v15 }
 0x1c7   :  { %1223 = vmatmul.msk.f32.gmra.mxu2 %vm525_vm13, %v1528_v18 }
 0x1fa   :  { %v251_v23 = vpop.f32.mrf.mxu2 }
 0x1fb   :  { %1181 = vmatmul.msk.f32.vlgmr.msrb.gmra.mxu3 %vm260_vm12, %v251_v23 }
 0x202   :  { %v254_v24 = vpop.f32.mrf.mxu2 }
 0x203   :  { %891 = vrot.lane.b32.xlu1 %v254_v24, %s1415_s0  ;;  %1182 = vmatmul.msk.f32.gmra.mxu3 %vm260_vm12, %v254_v24  ;;  %v1263_v25 = vpack.i.bf16 %v251_v23, %v254_v24 }
 0x205   :  { %1264 = vrot.lane.b32.xlu0 %v1263_v25, %s1416_s1 }
 0x20d   :  { %889 = vrot.lane.b32.xlu0 %v251_v23, %s1415_s0  ;;  %v1535_v23 = vld [vmem:[#allocation6 + $0x228] sm:$0xff] }
 0x20e   :  { %1224 = vmatmul.msk.f32.gmra.mxu2 %vm525_vm13, %v1535_v23 }
 0x277   :  { %v1265_v26 = vpop.permute.xlu0 %1264 }
 0x278   :  { %v1266_v27 = vunpack.i.l.bf16 %v1265_v26  ;;  %v1267_v28 = vunpack.i.h.bf16 %v1265_v26  ;;  %v888_v26 = vld [vmem:[#allocation6 + $0x270] sm:$0xff] }
 0x27a   :  { %707 = vmatpush.msrb.mxu1 %v1266_v27 }
 0x27c   :  { %708 = vmatpush.msrb.mxu1 %v1267_v28  ;;  %v338_v28 = vld [vmem:[#allocation6 + $0x230] sm:$0xff] }
 0x27d   :  { %1231 = vmatmul.msk.f32.vlgmr.msrb.gmra.mxu1 %vm88_vm1, %v312_v29  ;;  %1225 = vmatmul.msk.f32.gmra.mxu2 %vm525_vm13, %v338_v28 }
 0x27e   :  { %v288_v31 = vpop.f32.mrf.mxu3 }
 0x27f   :  { %v289_v32 = vadd.f32 %v1269_v30, %v288_v31 }
 0x281   :  { %v296_v33 = vand.u32 2147483647, %v289_v32  ;;  %v294_v52 = vmax.f32 %v289_v32, 0.0  ;;  %v339_v32 = vld [vmem:[#allocation6 + $0x238] sm:$0xff] }
 0x283   :  { %v298_v35 = vsub.f32 0.0, %v296_v33 }
 0x285   :  { %v300_v36 = vmul.f32 1.442695, %v298_v35  ;;  %1232 = vmatmul.msk.f32.gmra.mxu1 %vm88_vm1, %v313_v34  ;;  %1226 = vmatmul.msk.f32.gmra.mxu2 %vm525_vm13, %v339_v32 }
 0x286   :  { %v291_v37 = vpop.f32.mrf.mxu3 }
 0x287   :  { %1281 = vpow2.f32 %v300_v36  ;;  %v292_v38 = vadd.f32 %v1269_v30, %v291_v37  ;;  %v1550_v36 = vld [vmem:[#allocation6 + $0x240] sm:$0xff] }
 0x289   :  { %v297_v39 = vand.u32 2147483647, %v292_v38  ;;  %v295_v53 = vmax.f32 %v292_v38, 0.0 }
 0x28b   :  { %v299_v41 = vsub.f32 0.0, %v297_v39 }
 0x28d   :  { %v1282_v42 = vpop.eup %1281  ;;  %v302_v43 = vmul.f32 1.442695, %v299_v41  ;;  %1233 = vmatmul.msk.f32.gmra.mxu1 %vm88_vm1, %v314_v40  ;;  %1227 = vmatmul.msk.f32.gmra.mxu2 %vm525_vm13, %v1550_v36 }
 0x28e   :  { %v304_v44 = vadd.f32 1.0, %v1282_v42 }
 0x28f   :  { %1283 = vpow2.f32 %v302_v43  ;;  %v890_v43 = vpop.permute.xlu0 %889 }
 0x290   :  { %1285 = vlog2.f32 %v304_v44 }
 0x295   :  { %v1284_v46 = vpop.eup %1283  ;;  %1234 = vmatmul.msk.f32.gmra.mxu1 %vm88_vm1, %v315_v45 }
 0x296   :  { %v305_v47 = vadd.f32 1.0, %v1284_v46  ;;  %v1286_v48 = vpop.eup %1285 }
 0x297   :  { %v307_v50 = vmul.f32 0.6931472, %v1286_v48  ;;  %v892_v48 = vpop.permute.xlu1 %891 }
 0x298   :  { %1287 = vlog2.f32 %v305_v47 }
 0x299   :  { %v310_v56 = vadd.f32 %v307_v50, %v294_v52  ;;  %v1572_v50 = vld [vmem:[#allocation6 + $0x258] sm:$0xff] }
 0x29b   :  { %v458_v59 = vmul.f32 %v310_v56, %v1464_v16 }
 0x29d   :  { %1235 = vmatmul.msk.f32.gmra.mxu1 %vm88_vm1, %v316_v49 }
 0x29e   :  { %v1288_v51 = vpop.eup %1287 }
 0x29f   :  { %v309_v54 = vmul.f32 0.6931472, %v1288_v51 }
 0x2a1   :  { %v311_v55 = vadd.f32 %v309_v54, %v295_v53 }
 0x2a3   :  { %407 = vmatpush.msra.mxu3 %v311_v55  ;;  %v459_v57 = vmul.f32 %v311_v55, %v1468_v21 }
 0x2a5   :  { %408 = vmatpush.msra.mxu3 %v310_v56  ;;  %474 = vmatpush.msra.mxu0 %v459_v57  ;;  %v965_v57 = vsub.f32 0.0, %v1448_v6 }
 0x2a6   :  { %1236 = vmatmul.msk.f32.gmra.mxu1 %vm88_vm1, %v317_v58  ;;  %1183 = vmatmul.msk.f32.vlgmr.msra.gmra.mxu3 %vm88_vm1, %v312_v29 }
 0x2a7   :  { %475 = vmatpush.msra.mxu0 %v458_v59  ;;  %912 = vmatpush.msrb.mxu3 %v888_v26  ;;  %v967_v62 = vmul.f32 1.442695, %v965_v57 }
 0x2a8   :  { %1199 = vmatmul.msk.f32.vlgmr.msra.gmra.mxu0 %vm88_vm1, %v312_v29 }
 0x2a9   :  { %1289 = vpow2.f32 %v967_v62 }
 0x2ae   :  { %1237 = vmatmul.msk.f32.gmra.mxu1 %vm88_vm1, %v318_v60  ;;  %1184 = vmatmul.msk.f32.gmra.mxu3 %vm88_vm1, %v313_v34 }
 0x2b0   :  { %1200 = vmatmul.msk.f32.gmra.mxu0 %vm88_vm1, %v313_v34 }
 0x2b6   :  { %1238 = vmatmul.msk.f32.gmra.mxu1 %vm88_vm1, %v319_v61  ;;  %1185 = vmatmul.msk.f32.gmra.mxu3 %vm88_vm1, %v314_v40 }
 0x2b8   :  { %1201 = vmatmul.msk.f32.gmra.mxu0 %vm88_vm1, %v314_v40  ;;  %v1557_v40 = vld [vmem:[#allocation6 + $0x248] sm:$0xff] }
 0x2b9   :  { %1228 = vmatmul.msk.f32.gmra.mxu2 %vm525_vm13, %v1557_v40 }
 0x2be   :  { %1239 = vmatmul.msk.f32.gmra.mxu1 %vm88_vm1, %v320_v0  ;;  %1186 = vmatmul.msk.f32.gmra.mxu3 %vm88_vm1, %v315_v45 }
 0x2c0   :  { %1202 = vmatmul.msk.f32.gmra.mxu0 %vm88_vm1, %v315_v45  ;;  %v1565_v45 = vld [vmem:[#allocation6 + $0x250] sm:$0xff] }
 0x2c1   :  { %1229 = vmatmul.msk.f32.gmra.mxu2 %vm525_vm13, %v1565_v45 }
 0x2c6   :  { %1240 = vmatmul.msk.f32.gmra.mxu1 %vm88_vm1, %v321_v2  ;;  %1187 = vmatmul.msk.f32.gmra.mxu3 %vm88_vm1, %v316_v49 }
 0x2c8   :  { %1203 = vmatmul.msk.f32.gmra.mxu0 %vm88_vm1, %v316_v49 }
 0x2c9   :  { %1230 = vmatmul.msk.f32.gmra.mxu2 %vm525_vm13, %v1572_v50 }
 0x2ce   :  { %1241 = vmatmul.msk.f32.gmra.mxu1 %vm88_vm1, %v322_v4  ;;  %1188 = vmatmul.msk.f32.gmra.mxu3 %vm88_vm1, %v317_v58 }
 0x2d0   :  { %1204 = vmatmul.msk.f32.gmra.mxu0 %vm88_vm1, %v317_v58  ;;  %v591_v58 = vpop.f32.mrf.mxu2 }
 0x2d6   :  { %1242 = vmatmul.msk.f32.gmra.mxu1 %vm88_vm1, %v323_v8  ;;  %1189 = vmatmul.msk.f32.gmra.mxu3 %vm88_vm1, %v318_v60 }
 0x2d8   :  { %1205 = vmatmul.msk.f32.gmra.mxu0 %vm88_vm1, %v318_v60 }
 0x2de   :  { %1243 = vmatmul.msk.f32.gmra.mxu1 %vm88_vm1, %v324_v10  ;;  %1190 = vmatmul.msk.f32.gmra.mxu3 %vm88_vm1, %v319_v61 }
 0x2e0   :  { %1206 = vmatmul.msk.f32.gmra.mxu0 %vm88_vm1, %v319_v61 }
 0x2e6   :  { %1244 = vmatmul.msk.f32.gmra.mxu1 %vm88_vm1, %v325_v12  ;;  %1191 = vmatmul.msk.f32.gmra.mxu3 %vm88_vm1, %v320_v0 }
 0x2e8   :  { %1207 = vmatmul.msk.f32.gmra.mxu0 %vm88_vm1, %v320_v0 }
 0x2ee   :  { %1245 = vmatmul.msk.f32.gmra.mxu1 %vm88_vm1, %v326_v14  ;;  %1192 = vmatmul.msk.f32.gmra.mxu3 %vm88_vm1, %v321_v2 }
 0x2f0   :  { %1208 = vmatmul.msk.f32.gmra.mxu0 %vm88_vm1, %v321_v2 }
 0x2f6   :  { %1246 = vmatmul.msk.f32.gmra.mxu1 %vm88_vm1, %v327_v17  ;;  %1193 = vmatmul.msk.f32.gmra.mxu3 %vm88_vm1, %v322_v4 }
 0x2f8   :  { %1209 = vmatmul.msk.f32.gmra.mxu0 %vm88_vm1, %v322_v4 }
 0x2fa   :  { %v710_v19 = vpop.f32.mrf.mxu1 }
 0x2fb   :  { %v758_v20 = vmul.f32 %v710_v19, %v328_v63 }
 0x2fd   :  { %v774_v22 = vsel %vm525_vm13, %v758_v20, 0.0 }
 0x2fe   :  { %775 = vadd.xlane.f32.xlu2 %v774_v22  ;;  %1194 = vmatmul.msk.f32.gmra.mxu3 %vm88_vm1, %v323_v8 }
 0x300   :  { %1210 = vmatmul.msk.f32.gmra.mxu0 %vm88_vm1, %v323_v8 }
 0x302   :  { %v713_v24 = vpop.f32.mrf.mxu1 }
 0x303   :  { %v759_v25 = vmul.f32 %v713_v24, %v329_v1  ;;  %v594_v1 = vpop.f32.mrf.mxu2 }
 0x305   :  { %v777_v27 = vsel %vm525_vm13, %v759_v25, 0.0 }
 0x306   :  { %778 = vadd.xlane.f32.xlu1 %v777_v27  ;;  %1195 = vmatmul.msk.f32.gmra.mxu3 %vm88_vm1, %v324_v10 }
 0x308   :  { %1211 = vmatmul.msk.f32.gmra.mxu0 %vm88_vm1, %v324_v10 }
 0x30a   :  { %v716_v29 = vpop.f32.mrf.mxu1 }
 0x30b   :  { %v760_v30 = vmul.f32 %v716_v29, %v330_v3 }
 0x30d   :  { %v780_v31 = vsel %vm525_vm13, %v760_v30, 0.0 }
 0x30e   :  { %781 = vadd.xlane.f32.xlu0 %v780_v31  ;;  %1196 = vmatmul.msk.f32.gmra.mxu3 %vm88_vm1, %v325_v12 }
 0x310   :  { %1212 = vmatmul.msk.f32.gmra.mxu0 %vm88_vm1, %v325_v12  ;;  %v966_v12 = vsub.f32 0.0, %v1450_v7 }
 0x312   :  { %v719_v33 = vpop.f32.mrf.mxu1 }
 0x313   :  { %v761_v34 = vmul.f32 %v719_v33, %v331_v5  ;;  %v1290_v5 = vpop.eup %1289 }
 0x314   :  { %v971_v8 = vadd.f32 1.0, %v1290_v5 }
 0x315   :  { %v783_v35 = vsel %vm525_vm13, %v761_v34, 0.0 }
 0x316   :  { %784 = vadd.xlane.f32.xlu2 %v783_v35  ;;  %1197 = vmatmul.msk.f32.gmra.mxu3 %vm88_vm1, %v326_v14  ;;  %1291 = vrcp.f32 %v971_v8  ;;  %vm978_vm15 = vweird.f32 %v971_v8 }
 0x318   :  { %1213 = vmatmul.msk.f32.gmra.mxu0 %vm88_vm1, %v326_v14 }
 0x31a   :  { %v722_v37 = vpop.f32.mrf.mxu1 }
 0x31b   :  { %v762_v38 = vmul.f32 %v722_v37, %v332_v9 }
 0x31c   :  { %v1292_v19 = vpop.eup %1291 }
 0x31d   :  { %v786_v39 = vsel %vm525_vm13, %v762_v38, 0.0  ;;  %v974_v26 = vmul.f32 %v1292_v19, %v971_v8  ;;  %vm979_vm14 = vweird.f32 %v1292_v19 }
 0x31e   :  { %787 = vadd.xlane.f32.xlu2 %v786_v39  ;;  %1198 = vmatmul.msk.f32.gmra.mxu3 %vm88_vm1, %v327_v17 }
 0x31f   :  { %v975_v31 = vsub.f32 1.0, %v974_v26 }
 0x320   :  { %1214 = vmatmul.msk.f32.gmra.mxu0 %vm88_vm1, %v327_v17  ;;  %v969_v17 = vmul.f32 1.442695, %v966_v12  ;;  %vm980_vm1 = vmor %vm978_vm15, %vm979_vm14 }
 0x321   :  { %v976_v37 = vmul.f32 %v1292_v19, %v975_v31 }
 0x322   :  { %1293 = vpow2.f32 %v969_v17 }
 0x323   :  { %v725_v41 = vpop.f32.mrf.mxu1 }
 0x324   :  { %v763_v42 = vmul.f32 %v725_v41, %v1507_v11 }
 0x325   :  { %v477_v9 = vpop.f32.mrf.mxu0 }
 0x326   :  { %v789_v44 = vsel %vm525_vm13, %v763_v42, 0.0  ;;  %1247 = vmatmul.msk.f32.vlgmr.msrb.gmra.mxu3 %vm525_vm13, %v890_v43  ;;  %v977_v43 = vadd.f32 %v1292_v19, %v976_v37 }
 0x327   :  { %790 = vadd.xlane.f32.xlu2 %v789_v44  ;;  %v984_v44 = vand.u32 2147483648, %v971_v8 }
 0x329   :  { %v410_v59 = vpop.f32.mrf.mxu3 }
 0x32a   :  { %v639_v24 = vmul.f32 %v591_v58, %v410_v59 }
 0x32b   :  { %v728_v46 = vpop.f32.mrf.mxu1 }
 0x32c   :  { %v764_v47 = vmul.f32 %v728_v46, %v1514_v13  ;;  %v597_v13 = vpop.f32.mrf.mxu2  ;;  %v655_v29 = vmul.f32 1.442695, %v639_v24 }
 0x32d   :  { %v1587_v22 = vpop.f32.mrf.mxu0 }
 0x32e   :  { %v792_v49 = vsel %vm525_vm13, %v764_v47, 0.0  ;;  %1248 = vmatmul.msk.f32.gmra.mxu3 %vm525_vm13, %v892_v48  ;;  %1295 = vpow2.f32 %v655_v29  ;;  %v982_v47 = vand.u32 2147483647, %v971_v8 }
 0x32f   :  { %793 = vadd.xlane.f32.xlu2 %v792_v49  ;;  %v981_v49 = vsel %vm980_vm1, %v1292_v19, %v977_v43 }
 0x330   :  { %vm983_vm2 = vcmp.eq.f32.partialorder %v982_v47, 8.507059e+37 }
 0x331   :  { %v413_v3 = vpop.f32.mrf.mxu3 }
 0x333   :  { %v731_v51 = vpop.f32.mrf.mxu1 }
 0x334   :  { %v765_v52 = vmul.f32 %v731_v51, %v1521_v15  ;;  %v600_v25 = vpop.f32.mrf.mxu2 }
 0x335   :  { %v1594_v35 = vpop.f32.mrf.mxu0 }
 0x336   :  { %v795_v53 = vsel %vm525_vm13, %v765_v52, 0.0 }
 0x337   :  { %796 = vadd.xlane.f32.xlu2 %v795_v53  ;;  %v985_v53 = vor.u32 1.1754944e-38, %v984_v44 }
 0x339   :  { %v416_v15 = vpop.f32.mrf.mxu3  ;;  %v986_v58 = vsel %vm983_vm2, %v985_v53, %v981_v49 }
 0x33b   :  { %v734_v54 = vpop.f32.mrf.mxu1 }
 0x33c   :  { %v766_v55 = vmul.f32 %v734_v54, %v1528_v18  ;;  %v603_v38 = vpop.f32.mrf.mxu2 }
 0x33d   :  { %v486_v54 = vpop.f32.mrf.mxu0 }
 0x33e   :  { %v798_v56 = vsel %vm525_vm13, %v766_v55, 0.0  ;;  %v641_v55 = vmul.f32 %v597_v13, %v416_v15 }
 0x33f   :  { %799 = vadd.xlane.f32.xlu1 %v798_v56 }
 0x341   :  { %v419_v27 = vpop.f32.mrf.mxu3 }
 0x342   :  { %v642_v8 = vmul.f32 %v600_v25, %v419_v27 }
 0x343   :  { %v737_v60 = vpop.f32.mrf.mxu1 }
 0x344   :  { %v767_v61 = vmul.f32 %v737_v60, %v1535_v23  ;;  %v606_v59 = vpop.f32.mrf.mxu2  ;;  %v661_v13 = vmul.f32 1.442695, %v642_v8 }
 0x346   :  { %v801_v63 = vsel %vm525_vm13, %v767_v61, 0.0 }
 0x347   :  { %802 = vadd.xlane.f32.xlu2 %v801_v63 }
 0x349   :  { %v422_v39 = vpop.f32.mrf.mxu3 }
 0x34a   :  { %v643_v19 = vmul.f32 %v603_v38, %v422_v39 }
 0x34b   :  { %v740_v0 = vpop.f32.mrf.mxu1 }
 0x34c   :  { %v768_v2 = vmul.f32 %v740_v0, %v338_v28  ;;  %v1294_v28 = vpop.eup %1293  ;;  %v663_v29 = vmul.f32 1.442695, %v643_v19 }
 0x34d   :  { %v1591_v33 = vadd.f32 1.0, %v1294_v28  ;;  %v1296_v46 = vpop.eup %1295 }
 0x34e   :  { %v804_v4 = vsel %vm525_vm13, %v768_v2, 0.0  ;;  %v838_v52 = vmul.f32 0.0, %v1296_v46  ;;  %v1003_v2 = vmul.f32 %v986_v58, %v1448_v6  ;;  %v609_v6 = vpop.f32.mrf.mxu2 }
 0x34f   :  { %805 = vadd.xlane.f32.xlu0 %v804_v4  ;;  %1297 = vrcp.f32 %v1591_v33  ;;  %vm993_vm4 = vweird.f32 %v1591_v33 }
 0x351   :  { %v425_v0 = vpop.f32.mrf.mxu3 }
 0x352   :  { %v644_v37 = vmul.f32 %v606_v59, %v425_v0 }
 0x353   :  { %v743_v10 = vpop.f32.mrf.mxu1 }
 0x354   :  { %v769_v11 = vmul.f32 %v743_v10, %v339_v32  ;;  %v489_v10 = vpop.f32.mrf.mxu0 }
 0x355   :  { %v1298_v51 = vpop.eup %1297 }
 0x356   :  { %v807_v14 = vsel %vm525_vm13, %v769_v11, 0.0  ;;  %v989_v60 = vmul.f32 %v1298_v51, %v1591_v33  ;;  %vm994_vm3 = vweird.f32 %v1298_v51 }
 0x357   :  { %808 = vadd.xlane.f32.xlu2 %v807_v14  ;;  %vm995_vm5 = vmor %vm993_vm4, %vm994_vm3 }
 0x358   :  { %v990_v4 = vsub.f32 1.0, %v989_v60 }
 0x359   :  { %v428_v15 = vpop.f32.mrf.mxu3 }
 0x35a   :  { %v991_v11 = vmul.f32 %v1298_v51, %v990_v4  ;;  %v645_v46 = vmul.f32 %v609_v6, %v428_v15 }
 0x35b   :  { %v746_v18 = vpop.f32.mrf.mxu1 }
 0x35c   :  { %v770_v20 = vmul.f32 %v746_v18, %v1550_v36  ;;  %v640_v36 = vmul.f32 %v594_v1, %v413_v3  ;;  %v659_v1 = vmul.f32 1.442695, %v641_v55  ;;  %v992_v17 = vadd.f32 %v1298_v51, %v991_v11  ;;  %v492_v28 = vpop.f32.mrf.mxu0 }
 0x35d   :  { %v999_v18 = vand.u32 2147483648, %v1591_v33 }
 0x35e   :  { %v810_v23 = vsel %vm525_vm13, %v770_v20, 0.0  ;;  %v657_v41 = vmul.f32 1.442695, %v640_v36  ;;  %v996_v25 = vsel %vm995_vm5, %v1298_v51, %v992_v17 }
 0x35f   :  { %811 = vadd.xlane.f32.xlu2 %v810_v23  ;;  %v1000_v27 = vor.u32 1.1754944e-38, %v999_v18 }
 0x360   :  { %1299 = vpow2.f32 %v657_v41  ;;  %v665_v41 = vmul.f32 1.442695, %v644_v37 }
 0x361   :  { %1301 = vpow2.f32 %v659_v1 }
 0x362   :  { %1303 = vpow2.f32 %v661_v13 }
 0x363   :  { %v749_v30 = vpop.f32.mrf.mxu1  ;;  %1305 = vpow2.f32 %v663_v29 }
 0x364   :  { %v771_v32 = vmul.f32 %v749_v30, %v1557_v40  ;;  %1307 = vpow2.f32 %v665_v41 }
 0x366   :  { %v813_v34 = vsel %vm525_vm13, %v771_v32, 0.0  ;;  %v1300_v63 = vpop.eup %1299  ;;  %v612_v32 = vpop.f32.mrf.mxu2 }
 0x367   :  { %814 = vadd.xlane.f32.xlu1 %v813_v34  ;;  %v839_v5 = vmul.f32 0.0, %v1300_v63  ;;  %v1302_v14 = vpop.eup %1301  ;;  %v431_v34 = vpop.f32.mrf.mxu3 }
 0x368   :  { %v1304_v31 = vpop.eup %1303 }
 0x369   :  { %v1306_v43 = vpop.eup %1305 }
 0x36b   :  { %v752_v42 = vpop.f32.mrf.mxu1 }
 0x36c   :  { %v772_v40 = vmul.f32 %v752_v42, %v1565_v45  ;;  %v495_v42 = vpop.f32.mrf.mxu0 }
 0x36e   :  { %v816_v48 = vsel %vm525_vm13, %v772_v40, 0.0  ;;  %v615_v44 = vpop.f32.mrf.mxu2 }
 0x36f   :  { %817 = vadd.xlane.f32.xlu1 %v816_v48  ;;  %v434_v49 = vpop.f32.mrf.mxu3 }
 0x371   :  { %v776_v56 = vpop.xlane.xlu2 %775 }
 0x372   :  { %v822_v57 = vmul.f32 %v776_v56, %v477_v9 }
 0x373   :  { %v755_v45 = vpop.f32.mrf.mxu1 }
 0x374   :  { %v840_v61 = vadd.f32 %v838_v52, %v822_v57  ;;  %v773_v62 = vmul.f32 %v755_v45, %v1572_v50  ;;  %v1308_v52 = vpop.eup %1307  ;;  %v498_v53 = vpop.f32.mrf.mxu0 }
 0x376   :  { %842 = vst.msk [vmem:[#allocation2] sm:$0xff] %vm227_vm7, %v840_v61  ;;  %v819_v3 = vsel %vm525_vm13, %v773_v62, 0.0  ;;  %v844_v24 = vmul.f32 %v1302_v14, %v840_v61  ;;  %v618_v58 = vpop.f32.mrf.mxu2  ;;  %v647_v62 = vmul.f32 %v615_v44, %v434_v49 }
 0x377   :  { %1007 = vrot.lane.b32.xlu2 %v1003_v2, %s1417_s21  ;;  %820 = vadd.xlane.f32.xlu0 %v819_v3  ;;  %v437_v45 = vpop.f32.mrf.mxu3 }
 0x379   :  { %v779_v9 = vpop.xlane.xlu1 %778 }
 0x37a   :  { %v823_v50 = vmul.f32 %v779_v9, %v1587_v22  ;;  %v997_v22 = vand.u32 2147483647, %v1591_v33 }
 0x37c   :  { %v841_v12 = vadd.f32 %v839_v5, %v823_v50  ;;  %vm998_vm6 = vcmp.eq.f32.partialorder %v997_v22, 8.507059e+37  ;;  %v501_v0 = vpop.f32.mrf.mxu0  ;;  %v671_v5 = vmul.f32 1.442695, %v647_v62  ;;  %v648_v50 = vmul.f32 %v618_v58, %v437_v45 }
 0x37d   :  { %v1001_v30 = vsel %vm998_vm6, %v1000_v27, %v996_v25 }
 0x37e   :  { %843 = vst.msk [vmem:[#allocation2 + $0x8] sm:$0xff] %vm227_vm7, %v841_v12  ;;  %v1004_v33 = vmul.f32 %v1001_v30, %v1450_v7  ;;  %v845_v38 = vmul.f32 %v1304_v31, %v841_v12  ;;  %v667_v7 = vmul.f32 1.442695, %v645_v46  ;;  %v621_v4 = vpop.f32.mrf.mxu2  ;;  %v673_v14 = vmul.f32 1.442695, %v648_v50 }
 0x37f   :  { %v440_v8 = vpop.f32.mrf.mxu3 }
 0x380   :  { %1309 = vpow2.f32 %v667_v7  ;;  %v649_v19 = vmul.f32 %v621_v4, %v440_v8 }
 0x381   :  { %v782_v20 = vpop.xlane.xlu0 %781 }
 0x382   :  { %v824_v23 = vmul.f32 %v782_v20, %v1594_v35  ;;  %v675_v25 = vmul.f32 1.442695, %v649_v19 }
 0x384   :  { %v846_v26 = vadd.f32 %v844_v24, %v824_v23  ;;  %v504_v13 = vpop.f32.mrf.mxu0 }
 0x386   :  { %848 = vst.msk [vmem:[#allocation2 + $0x10] sm:$0xff] %vm227_vm7, %v846_v26  ;;  %v850_v48 = vmul.f32 %v1306_v43, %v846_v26  ;;  %v1310_v61 = vpop.eup %1309  ;;  %v624_v15 = vpop.f32.mrf.mxu2 }
 0x387   :  { %v443_v18 = vpop.f32.mrf.mxu3 }
 0x388   :  { %v650_v29 = vmul.f32 %v624_v15, %v443_v18 }
 0x389   :  { %v785_v36 = vpop.xlane.xlu2 %784 }
 0x38a   :  { %v825_v35 = vmul.f32 %v785_v36, %v486_v54  ;;  %v646_v54 = vmul.f32 %v612_v32, %v431_v34 }
 0x38b   :  { %1009 = vrot.lane.b32.xlu0 %v1004_v33, %s1417_s21  ;;  %v677_v33 = vmul.f32 1.442695, %v650_v29  ;;  %v1021_v29 = vld [vmem:[#allocation6 + $0xb0] sm:$0xff] }
 0x38c   :  { %v847_v39 = vadd.f32 %v845_v38, %v825_v35  ;;  %v669_v60 = vmul.f32 1.442695, %v646_v54  ;;  %v507_v26 = vpop.f32.mrf.mxu0 }
 0x38e   :  { %849 = vst.msk [vmem:[#allocation2 + $0x18] sm:$0xff] %vm227_vm7, %v847_v39  ;;  %v851_v57 = vmul.f32 %v1308_v52, %v847_v39  ;;  %1311 = vpow2.f32 %v669_v60 }
 0x38f   :  { %1313 = vpow2.f32 %v671_v5  ;;  %v446_v31 = vpop.f32.mrf.mxu3 }
 0x390   :  { %1315 = vpow2.f32 %v673_v14 }
 0x391   :  { %v788_v40 = vpop.xlane.xlu2 %787  ;;  %1317 = vpow2.f32 %v675_v25 }
 0x392   :  { %v826_v47 = vmul.f32 %v788_v40, %v489_v10  ;;  %1319 = vpow2.f32 %v677_v33  ;;  %v1018_v33 = vld [vmem:[#allocation6 + $0x98] sm:$0xff] }
 0x394   :  { %v852_v51 = vadd.f32 %v850_v48, %v826_v47  ;;  %v1312_v9 = vpop.eup %1311  ;;  %v510_v35 = vpop.f32.mrf.mxu0 }
 0x395   :  { %v1314_v17 = vpop.eup %1313 }
 0x396   :  { %854 = vst.msk [vmem:[#allocation2 + $0x20] sm:$0xff] %vm227_vm7, %v852_v51  ;;  %v856_v2 = vmul.f32 %v1310_v61, %v852_v51  ;;  %v1316_v27 = vpop.eup %1315 }
 0x397   :  { %v1318_v37 = vpop.eup %1317  ;;  %v449_v40 = vpop.f32.mrf.mxu3 }
 0x398   :  { %v1320_v47 = vpop.eup %1319 }
 0x39a   :  { %v791_v55 = vpop.xlane.xlu2 %790 }
 0x39b   :  { %v827_v56 = vmul.f32 %v791_v55, %v492_v28  ;;  %v627_v28 = vpop.f32.mrf.mxu2 }
 0x39c   :  { %v651_v38 = vmul.f32 %v627_v28, %v446_v31  ;;  %v513_v51 = vpop.f32.mrf.mxu0  ;;  %v1022_v28 = vld [vmem:[#allocation6 + $0xb8] sm:$0xff]  ;;  %v1020_v31 = vld [vmem:[#allocation6 + $0xa8] sm:$0xff] }
 0x39d   :  { %v853_v59 = vadd.f32 %v851_v57, %v827_v56  ;;  %1037 = vmatpush.msrb.mxu2 %v1022_v28 }
 0x39e   :  { %v679_v46 = vmul.f32 1.442695, %v651_v38 }
 0x39f   :  { %855 = vst.msk [vmem:[#allocation2 + $0x28] sm:$0xff] %vm227_vm7, %v853_v59  ;;  %v857_v12 = vmul.f32 %v1312_v9, %v853_v59  ;;  %v452_v56 = vpop.f32.mrf.mxu3  ;;  %1038 = vmatpush.msrb.mxu2 %v1021_v29 }
 0x3a0   :  { %1321 = vpow2.f32 %v679_v46 }
 0x3a1   :  { %1039 = vmatpush.msrb.mxu2 %v1020_v31 }
 0x3a2   :  { %v794_v63 = vpop.xlane.xlu2 %793 }
 0x3a3   :  { %v828_v1 = vmul.f32 %v794_v63, %v495_v42  ;;  %v630_v43 = vpop.f32.mrf.mxu2 }
 0x3a4   :  { %v652_v48 = vmul.f32 %v630_v43, %v449_v40  ;;  %v516_v61 = vpop.f32.mrf.mxu0  ;;  %v924_v43 = vld [vmem:[#allocation2 + $0x10] sm:$0xff] }
 0x3a5   :  { %v858_v3 = vadd.f32 %v856_v2, %v828_v1  ;;  %v886_v40 = vld [vmem:[#allocation6 + $0x260] sm:$0xff] }
 0x3a6   :  { %v681_v55 = vmul.f32 1.442695, %v652_v48  ;;  %v1322_v57 = vpop.eup %1321  ;;  %v927_v38 = vld [vmem:[#allocation2 + $0x28] sm:$0xff]  ;;  %v887_v48 = vld [vmem:[#allocation6 + $0x268] sm:$0xff] }
 0x3a7   :  { %860 = vst.msk [vmem:[#allocation2 + $0x30] sm:$0xff] %vm227_vm7, %v858_v3  ;;  %v862_v23 = vmul.f32 %v1314_v17, %v858_v3  ;;  %v455_v2 = vpop.f32.mrf.mxu3 }
 0x3a8   :  { %1323 = vpow2.f32 %v681_v55  ;;  %v1054_v55 = vld [vmem:[#allocation6 + $0x30] sm:$0xff] }
 0x3aa   :  { %v797_v10 = vpop.xlane.xlu2 %796 }
 0x3ab   :  { %v829_v11 = vmul.f32 %v797_v10, %v498_v53  ;;  %v633_v54 = vpop.f32.mrf.mxu2 }
 0x3ac   :  { %v653_v58 = vmul.f32 %v633_v54, %v452_v56  ;;  %v519_v10 = vpop.f32.mrf.mxu0  ;;  %v1055_v54 = vld [vmem:[#allocation6 + $0x38] sm:$0xff]  ;;  %v1053_v56 = vld [vmem:[#allocation6 + $0x28] sm:$0xff] }
 0x3ad   :  { %v859_v6 = vadd.f32 %v857_v12, %v829_v11  ;;  %1076 = vmatpush.msra.mxu3 %v1055_v54 }
 0x3ae   :  { %v683_v63 = vmul.f32 1.442695, %v653_v58  ;;  %v1324_v1 = vpop.eup %1323 }
 0x3af   :  { %861 = vst.msk [vmem:[#allocation2 + $0x38] sm:$0xff] %vm227_vm7, %v859_v6  ;;  %v863_v34 = vmul.f32 %v1316_v27, %v859_v6  ;;  %1077 = vmatpush.msra.mxu3 %v1054_v55 }
 0x3b0   :  { %1325 = vpow2.f32 %v683_v63 }
 0x3b1   :  { %1078 = vmatpush.msra.mxu3 %v1053_v56 }
 0x3b2   :  { %v800_v20 = vpop.xlane.xlu1 %799 }
 0x3b3   :  { %v830_v22 = vmul.f32 %v800_v20, %v501_v0  ;;  %v636_v0 = vpop.f32.mrf.mxu2 }
 0x3b4   :  { %v654_v3 = vmul.f32 %v636_v0, %v455_v2  ;;  %v522_v17 = vpop.f32.mrf.mxu0 }
 0x3b5   :  { %v864_v24 = vadd.f32 %v862_v23, %v830_v22 }
 0x3b6   :  { %v685_v50 = vmul.f32 1.442695, %v654_v3  ;;  %v1326_v11 = vpop.eup %1325  ;;  %v1052_v3 = vld [vmem:[#allocation6 + $0x20] sm:$0xff] }
 0x3b7   :  { %866 = vst.msk [vmem:[#allocation2 + $0x40] sm:$0xff] %vm227_vm7, %v864_v24  ;;  %v868_v42 = vmul.f32 %v1318_v37, %v864_v24  ;;  %v929_v37 = vld [vmem:[#allocation2 + $0x38] sm:$0xff]  ;;  %1079 = vmatpush.msra.mxu3 %v1052_v3 }
 0x3b8   :  { %1327 = vpow2.f32 %v685_v50  ;;  %v1116_v50 = vld [vmem:[#allocation6 + $0x118] sm:$0xff] }
 0x3ba   :  { %v803_v30 = vpop.xlane.xlu2 %802 }
 0x3bb   :  { %v831_v32 = vmul.f32 %v803_v30, %v504_v13 }
 0x3bd   :  { %v865_v36 = vadd.f32 %v863_v34, %v831_v32  ;;  %v1019_v34 = vld [vmem:[#allocation6 + $0xa0] sm:$0xff] }
 0x3be   :  { %v1328_v15 = vpop.eup %1327  ;;  %1040 = vmatpush.msrb.mxu2 %v1019_v34 }
 0x3bf   :  { %867 = vst.msk [vmem:[#allocation2 + $0x48] sm:$0xff] %vm227_vm7, %v865_v36  ;;  %v869_v52 = vmul.f32 %v1320_v47, %v865_v36  ;;  %v930_v36 = vld [vmem:[#allocation2 + $0x40] sm:$0xff] }
 0x3c0   :  { %1041 = vmatpush.msrb.mxu2 %v1018_v33  ;;  %v922_v47 = vld [vmem:[#allocation2] sm:$0xff] }
 0x3c2   :  { %v806_v39 = vpop.xlane.xlu0 %805 }
 0x3c3   :  { %v832_v41 = vmul.f32 %v806_v39, %v507_v26  ;;  %v926_v39 = vld [vmem:[#allocation2 + $0x20] sm:$0xff] }
 0x3c5   :  { %v870_v44 = vadd.f32 %v868_v42, %v832_v41  ;;  %v925_v41 = vld [vmem:[#allocation2 + $0x18] sm:$0xff]  ;;  %v914_v42 = vpop.f32.mrf.mxu3 }
 0x3c6   :  { %v931_v32 = vld [vmem:[#allocation2 + $0x48] sm:$0xff]  ;;  %v920_v46 = vmul.f32 %v914_v42, %v886_v40 }
 0x3c7   :  { %872 = vst.msk [vmem:[#allocation2 + $0x50] sm:$0xff] %vm227_vm7, %v870_v44  ;;  %v874_v60 = vmul.f32 %v1322_v57, %v870_v44  ;;  %v923_v44 = vld [vmem:[#allocation2 + $0x8] sm:$0xff] }
 0x3c8   :  { %v1270_v57 = vld [vmem:[#allocation6 + $0x15e] ss:$0 sm:$0xff] }
 0x3c9   :  { %v940_v58 = vmul.f32 %v1270_v57, %v1464_v16  ;;  %v1118_v16 = vld [vmem:[#allocation6 + $0x128] sm:$0xff] }
 0x3ca   :  { %v809_v49 = vpop.xlane.xlu2 %808 }
 0x3cb   :  { %v833_v7 = vmul.f32 %v809_v49, %v510_v35  ;;  %v928_v35 = vld [vmem:[#allocation2 + $0x30] sm:$0xff] }
 0x3cd   :  { %v871_v53 = vadd.f32 %v869_v52, %v833_v7  ;;  %v917_v49 = vpop.f32.mrf.mxu3  ;;  %v1017_v7 = vld [vmem:[#allocation6 + $0x90] sm:$0xff]  ;;  %v1016_v52 = vld [vmem:[#allocation6 + $0x88] sm:$0xff] }
 0x3ce   :  { %v932_v30 = vld [vmem:[#allocation2 + $0x50] sm:$0xff]  ;;  %1042 = vmatpush.msrb.mxu2 %v1017_v7 }
 0x3cf   :  { %873 = vst.msk [vmem:[#allocation2 + $0x58] sm:$0xff] %vm227_vm7, %v871_v53  ;;  %v875_v8 = vmul.f32 %v1324_v1, %v871_v53  ;;  %v1015_v53 = vld [vmem:[#allocation6 + $0x80] sm:$0xff] }
 0x3d0   :  { %1043 = vmatpush.msrb.mxu2 %v1016_v52 }
 0x3d2   :  { %v812_v45 = vpop.xlane.xlu2 %811  ;;  %1044 = vmatpush.msrb.mxu2 %v1015_v53 }
 0x3d3   :  { %v834_v59 = vmul.f32 %v812_v45, %v513_v51  ;;  %v921_v51 = vmul.f32 %v917_v49, %v887_v48 }
 0x3d5   :  { %v876_v62 = vadd.f32 %v874_v60, %v834_v59 }
 0x3d6   :  { %v933_v27 = vld [vmem:[#allocation2 + $0x58] sm:$0xff] }
 0x3d7   :  { %878 = vst.msk [vmem:[#allocation2 + $0x60] sm:$0xff] %vm227_vm7, %v876_v62  ;;  %v880_v6 = vmul.f32 %v1326_v11, %v876_v62  ;;  %v941_v62 = vmul.f32 %v1270_v57, %v1468_v21  ;;  %v1114_v11 = vld [vmem:[#allocation6 + $0x108] sm:$0xff] }
 0x3da   :  { %v815_v4 = vpop.xlane.xlu1 %814  ;;  %v1008_v60 = vpop.permute.xlu2 %1007 }
 0x3db   :  { %v835_v5 = vmul.f32 %v815_v4, %v516_v61  ;;  %v1120_v4 = vld [vmem:[#allocation6 + $0x138] sm:$0xff] }
 0x3dd   :  { %v877_v9 = vadd.f32 %v875_v8, %v835_v5  ;;  %v1119_v5 = vld [vmem:[#allocation6 + $0x130] sm:$0xff]  ;;  %v1117_v8 = vld [vmem:[#allocation6 + $0x120] sm:$0xff] }
 0x3de   :  { %v934_v26 = vld [vmem:[#allocation2 + $0x60] sm:$0xff] }
 0x3df   :  { %879 = vst.msk [vmem:[#allocation2 + $0x68] sm:$0xff] %vm227_vm7, %v877_v9  ;;  %v881_v20 = vmul.f32 %v1328_v15, %v877_v9  ;;  %v1109_v15 = vld [vmem:[#allocation6 + $0xe0] sm:$0xff] }
 0x3e2   :  { %v818_v12 = vpop.xlane.xlu1 %817 }
 0x3e3   :  { %v836_v13 = vmul.f32 %v818_v12, %v519_v10  ;;  %v1115_v10 = vld [vmem:[#allocation6 + $0x110] sm:$0xff]  ;;  %v1113_v12 = vld [vmem:[#allocation6 + $0x100] sm:$0xff] }
 0x3e5   :  { %v882_v14 = vadd.f32 %v880_v6, %v836_v13  ;;  %v1112_v13 = vld [vmem:[#allocation6 + $0xf8] sm:$0xff]  ;;  %v1111_v6 = vld [vmem:[#allocation6 + $0xf0] sm:$0xff] }
 0x3e6   :  { %v935_v25 = vld [vmem:[#allocation2 + $0x68] sm:$0xff] }
 0x3e7   :  { %884 = vst.msk [vmem:[#allocation2 + $0x70] sm:$0xff] %vm227_vm7, %v882_v14  ;;  %v1110_v14 = vld [vmem:[#allocation6 + $0xe8] sm:$0xff] }
 0x3ea   :  { %v821_v18 = vpop.xlane.xlu0 %820 }
 0x3eb   :  { %v837_v19 = vmul.f32 %v821_v18, %v522_v17  ;;  %v1108_v17 = vld [vmem:[#allocation6 + $0xd8] sm:$0xff]  ;;  %v1107_v18 = vld [vmem:[#allocation6 + $0xd0] sm:$0xff] }
 0x3ed   :  { %v883_v22 = vadd.f32 %v881_v20, %v837_v19  ;;  %v1106_v19 = vld [vmem:[#allocation6 + $0xc8] sm:$0xff]  ;;  %v1105_v20 = vld [vmem:[#allocation6 + $0xc0] sm:$0xff] }
 0x3ee   :  { %v936_v24 = vld [vmem:[#allocation2 + $0x70] sm:$0xff] }
 0x3ef   :  { %885 = vst.msk [vmem:[#allocation2 + $0x78] sm:$0xff] %vm227_vm7, %v883_v22  ;;  %v1271_v22 = vld [vmem:[#allocation6 + $0x140] ss:$0 sm:$0xff] }
 0x3f6   :  { %v937_v23 = vld [vmem:[#allocation2 + $0x78] sm:$0xff] }
 0x3f7   :  { %942 = vmatpush.msrb.mxu0 %v937_v23 }
 0x3f9   :  { %943 = vmatpush.msrb.mxu0 %v936_v24 }
 0x3fb   :  { %944 = vmatpush.msrb.mxu0 %v935_v25 }
 0x3fd   :  { %945 = vmatpush.msrb.mxu0 %v934_v26  ;;  %v1010_v1 = vpop.permute.xlu0 %1009 }
 0x3ff   :  { %946 = vmatpush.msrb.mxu0 %v933_v27 }
 0x401   :  { %947 = vmatpush.msrb.mxu0 %v932_v30 }
 0x403   :  { %948 = vmatpush.msrb.mxu0 %v931_v32 }
 0x405   :  { %949 = vmatpush.msrb.mxu0 %v930_v36 }
 0x407   :  { %950 = vmatpush.msrb.mxu0 %v929_v37 }
 0x409   :  { %951 = vmatpush.msrb.mxu0 %v928_v35 }
 0x40b   :  { %952 = vmatpush.msrb.mxu0 %v927_v38 }
 0x40d   :  { %953 = vmatpush.msrb.mxu0 %v926_v39 }
 0x40f   :  { %954 = vmatpush.msrb.mxu0 %v925_v41 }
 0x411   :  { %955 = vmatpush.msrb.mxu0 %v924_v43 }
 0x413   :  { %956 = vmatpush.msrb.mxu0 %v923_v44 }
 0x415   :  { %957 = vmatpush.msrb.mxu0 %v922_v47 }
 0x416   :  { %958 = vmatmul.f32.vlgmr.msrb.gmra.mxu0 %v920_v46  ;;  %v1272_v46 = vld [vmem:[#allocation6 + $0x141] ss:$0 sm:$0xff] }
 0x417   :  { %1123 = vmatpush.msra.mxu0 %v1120_v4 }
 0x419   :  { %1124 = vmatpush.msra.mxu0 %v1119_v5 }
 0x41b   :  { %1125 = vmatpush.msra.mxu0 %v1118_v16 }
 0x41d   :  { %1126 = vmatpush.msra.mxu0 %v1117_v8 }
 0x41e   :  { %961 = vmatmul.f32.gmra.mxu0 %v921_v51 }
 0x41f   :  { %1127 = vmatpush.msra.mxu0 %v1116_v50 }
 0x421   :  { %1128 = vmatpush.msra.mxu0 %v1115_v10 }
 0x423   :  { %1129 = vmatpush.msra.mxu0 %v1114_v11 }
 0x425   :  { %1130 = vmatpush.msra.mxu0 %v1113_v12 }
 0x427   :  { %1131 = vmatpush.msra.mxu0 %v1112_v13 }
 0x429   :  { %1132 = vmatpush.msra.mxu0 %v1111_v6 }
 0x42b   :  { %1133 = vmatpush.msra.mxu0 %v1110_v14 }
 0x42d   :  { %1134 = vmatpush.msra.mxu0 %v1109_v15 }
 0x42f   :  { %1135 = vmatpush.msra.mxu0 %v1108_v17 }
 0x431   :  { %1136 = vmatpush.msra.mxu0 %v1107_v18 }
 0x433   :  { %1137 = vmatpush.msra.mxu0 %v1106_v19 }
 0x435   :  { %1138 = vmatpush.msra.mxu0 %v1105_v20 }
 0x493   :  { %v959_v45 = vpop.f32.mrf.mxu0 }
 0x494   :  { %v960_v59 = vadd.f32 %v959_v45, %v940_v58 }
 0x496   :  { %v1013_v61 = vmul.f32 %v1008_v60, %v960_v59 }
 0x498   :  { %1249 = vmatmul.msk.f32.vlgmr.msrb.gmra.mxu2 %vm227_vm7, %v1013_v61 }
 0x49b   :  { %v962_v63 = vpop.f32.mrf.mxu0 }
 0x49c   :  { %v963_v0 = vadd.f32 %v962_v63, %v941_v62 }
 0x49e   :  { %v1014_v2 = vmul.f32 %v1010_v1, %v963_v0 }
 0x4a0   :  { %1250 = vmatmul.msk.f32.gmra.mxu2 %vm227_vm7, %v1014_v2 }
 0x51b   :  { %v1046_v9 = vpop.f32.mrf.mxu2 }
 0x51c   :  { %1251 = vmatmul.msk.f32.vlgmr.msra.gmra.mxu3 %vm50_vm0, %v1046_v9 }
 0x523   :  { %v1049_v21 = vpop.f32.mrf.mxu2 }
 0x524   :  { %1252 = vmatmul.msk.f32.gmra.mxu3 %vm50_vm0, %v1049_v21 }
 0x59f   :  { %v1081_v23 = vpop.f32.mrf.mxu3 }
 0x5a0   :  { %v1082_v24 = vadd.f32 %v1271_v22, %v1081_v23 }
 0x5a2   :  { %v1089_v25 = vmul.f32 %v1082_v24, %v1082_v24  ;;  %v1087_v38 = vmul.f32 0.5, %v1082_v24 }
 0x5a4   :  { %v1091_v26 = vmul.f32 %v1089_v25, %v1082_v24 }
 0x5a6   :  { %v1093_v27 = vmul.f32 0.044715, %v1091_v26 }
 0x5a7   :  { %v1084_v28 = vpop.f32.mrf.mxu3 }
 0x5a8   :  { %v1095_v29 = vadd.f32 %v1093_v27, %v1082_v24  ;;  %v1085_v30 = vadd.f32 %v1271_v22, %v1084_v28 }
 0x5aa   :  { %v1097_v31 = vmul.f32 0.7978846, %v1095_v29  ;;  %v1090_v32 = vmul.f32 %v1085_v30, %v1085_v30  ;;  %v1088_v43 = vmul.f32 0.5, %v1085_v30 }
 0x5ac   :  { %1329 = vtanh.f32 %v1097_v31  ;;  %v1092_v34 = vmul.f32 %v1090_v32, %v1085_v30 }
 0x5ae   :  { %v1094_v36 = vmul.f32 0.044715, %v1092_v34 }
 0x5b0   :  { %v1096_v33 = vadd.f32 %v1094_v36, %v1085_v30 }
 0x5b2   :  { %v1330_v37 = vpop.eup %1329  ;;  %v1098_v35 = vmul.f32 0.7978846, %v1096_v33 }
 0x5b3   :  { %v1101_v39 = vadd.f32 1.0, %v1330_v37 }
 0x5b4   :  { %1331 = vtanh.f32 %v1098_v35 }
 0x5b5   :  { %v1103_v41 = vmul.f32 %v1101_v39, %v1087_v38 }
 0x5b7   :  { %1139 = vmatmul.f32.vlgmr.msra.gmra.mxu0 %v1103_v41 }
 0x5ba   :  { %v1332_v42 = vpop.eup %1331 }
 0x5bb   :  { %v1102_v40 = vadd.f32 1.0, %v1332_v42 }
 0x5bd   :  { %v1104_v44 = vmul.f32 %v1102_v40, %v1088_v43 }
 0x5bf   :  { %1142 = vmatmul.f32.gmra.mxu0 %v1104_v44 }
 0x634   :  { %v1140_v47 = vpop.f32.mrf.mxu0 }
 0x635   :  { %v1141_v48 = vadd.f32 %v1272_v46, %v1140_v47 }
 0x637   :  { %1146 = vst.msk [vmem:[#allocation8] sm:$0xff] %vm50_vm0, %v1141_v48 }
 0x63c   :  { %v1143_v49 = vpop.f32.mrf.mxu0 }
 0x63d   :  { %v1144_v51 = vadd.f32 %v1272_v46, %v1143_v49 }
 0x63f   :  { %1147 = vst.msk [vmem:[#allocation8 + $0x8] sm:$0xff] %vm50_vm0, %v1144_v51 }
 0x640   :  { %1160 = dma.vmem_to_hbm [thread:$0]  %s1153_s23, 256, %s1155_s26, [#allocation5], %s1412_s17, %s1412_s17, %s1413_s18  }
 0x641   :  { %1409 = dma.done.wait [#allocation5], 256  }
 0x642   :  { %1410 = vsyncadd [#allocation5], 4294967040 }
 0x643   :  { %1165 = vsyncpa [#allocation4], 1 }
 0x644   :  { %1166 = vsyncpa [#allocation7], 1 }
 0x645   :  { %1167 = vsyncpa [#allocation5], 1 }

</bundles_post_ra>
